<compile_context>
chip_gen: v6e
topology: v6e:2x2x1
jax: 0.10.0
libtpu: 0.0.40
codegen_flags: <defaults>
</compile_context>

<pallas_src>
import numpy as np
import jax
import jax.numpy as jnp
from jax import lax
from jax.experimental import pallas as pl
from jax.experimental.pallas import tpu as pltpu

# ---- fixed (non-trainable) parameters from TSFuzzyLayer.__init__ -----------
SUB_SYSTEMS_MAT = np.array(
    [[-0.2, -0.1, -0.05, -0.05, -0.05, -0.01, -0.055, -0.01, 0.0],
     [0.0, -0.002, -0.001, -0.001, -0.001, -0.0002, 0.0008, -0.0002, 0.0]],
    dtype=np.float32)                                                  # [2, 9]
SUB_SYSTEMS_BIAS = np.array(
    [1.0, 0.7, 0.275, 0.4, 0.25, 0.07, 0.2225, 0.07, 0.0],
    dtype=np.float32)                                                  # [9]

X1_MEANS, X1_SIGMA = (0.0, 2.0, 4.0), 0.75
X2_MEANS, X2_SIGMA = (0.0, 90.0, 180.0), 30.0

_INV_2S1SQ = 1.0 / (2.0 * X1_SIGMA * X1_SIGMA)
_INV_2S2SQ = 1.0 / (2.0 * X2_SIGMA * X2_SIGMA)
_RAD2DEG = 180.0 / np.pi

# Hastings / Abramowitz-Stegun 4.4.46 acos coefficients, pre-scaled to degrees
# (folds the rad2deg multiply into the polynomial; |err| <= 2e-8 rad).
_ACOS_DEG = tuple(np.float32(c * _RAD2DEG) for c in
                  (1.5707963050, -0.2145988016, 0.0889789874, -0.0501743046,
                   0.0308918810, -0.0170881256, 0.0066700901, -0.0012624911))


def _round_up(x, m):
    return ((x + m - 1) // m) * m


def _acos_deg(x):
    """acos in degrees.  One EUP sqrt, no divides; sqrt(max(1-|x|,0)) saturates
    at |x| >= 1 so no explicit clip of the cosine is needed."""
    ax = jnp.abs(x)
    c0, c1, c2, c3, c4, c5, c6, c7 = _ACOS_DEG
    p = ((((((c7 * ax + c6) * ax + c5) * ax + c4) * ax + c3) * ax + c2) * ax
         + c1) * ax + c0
    r = jnp.sqrt(jnp.maximum(1.0 - ax, 0.0)) * p
    return jnp.where(x < 0.0, jnp.float32(180.0) - r, r)


def _gauss(x, mean, inv_two_sigma_sq):
    d = x - mean
    return jnp.exp((d * d) * (-inv_two_sigma_sq))


def _fuzzy_attention(ax, ay, bx, by, is_priority):
    """Shared per-(edge, batch) TS-fuzzy math.  All VPU/EUP, no MXU."""
    a_sq = ax * ax + ay * ay
    x1 = jnp.sqrt(a_sq)                                   # ||alpha||

    b_sq = bx * bx + by * by
    dotp = -(ax * bx + ay * by)                            # <-alpha, beta>
    inv_nrm = lax.rsqrt(jnp.maximum(a_sq * b_sq, jnp.float32(1e-12)))
    x2 = _acos_deg(dotp * inv_nrm)                         # angle in degrees

    # Gaussian memberships; mean-0 rules reuse x^2 directly (saves sub+mul).
    x1_s = jnp.exp(a_sq * (-_INV_2S1SQ))
    x1_m = _gauss(x1, 2.0, _INV_2S1SQ)
    x1_l = _gauss(x1, 4.0, _INV_2S1SQ)
    x2_s = jnp.exp((x2 * x2) * (-_INV_2S2SQ))
    x2_m = _gauss(x2, 90.0, _INV_2S2SQ)
    x2_l = _gauss(x2, 180.0, _INV_2S2SQ)

    tv00 = jnp.minimum(x1_s, x2_s)   # rule 0
    tv01 = jnp.minimum(x1_s, x2_m)   # rule 1
    tv02 = jnp.minimum(x1_s, x2_l)   # rule 2
    tv10 = jnp.minimum(x1_m, x2_s)   # rule 3
    tv11 = jnp.minimum(x1_m, x2_m)   # rule 4
    tv12 = jnp.minimum(x1_m, x2_l)   # rule 5
    tv20 = jnp.minimum(x1_l, x2_s)   # rule 6
    tv21 = jnp.minimum(x1_l, x2_m)   # rule 7
    tv22 = jnp.minimum(x1_l, x2_l)   # rule 8

    den = (((tv00 + tv01) + (tv02 + tv10))
           + ((tv11 + tv12) + (tv20 + tv21)) + tv22)
    den = jnp.maximum(den, jnp.float32(1e-30))             # guard 0/0 underflow

    # Consequents with the fixed SUB_SYSTEMS constants algebraically folded:
    # rules 2,3,4 share the linear part; rules 5 and 7 are identical; rule 8=0.
    cons0 = 1.0 - 0.2 * x1
    cons1 = 0.7 - 0.1 * x1 - 0.002 * x2
    lin234 = -0.05 * x1 - 0.001 * x2
    cons57 = 0.07 - 0.01 * x1 - 0.0002 * x2
    cons6 = 0.2225 - 0.055 * x1 + 0.0008 * x2
    num = (tv00 * cons0 + tv01 * cons1
           + (tv02 + tv10 + tv11) * lin234
           + (0.275 * tv02 + 0.4 * tv10 + 0.25 * tv11)
           + (tv12 + tv21) * cons57
           + tv20 * cons6)
    # TODO(synk): on v6e/v7x the tv min/add chain could run packed bf16 for
    # ~1.3x VPU throughput; kept f32 so results match on all chip generations.

    att = num * pl.reciprocal(den, approx=True)
    return jnp.where(is_priority, jnp.float32(1.0), att)


def _fused_gather_kernel(idx_ref, fhi_ref, flo_ref, att_ref):
    """Gather+subtract fused in-kernel.

    idx_ref: [TE, 3] int32 (src, dst, priority); fhi/flo: [N_pad, 6*B_pad]
    bf16 hi/lo split of the node features (VMEM-resident); att: [TE, B_pad].
    """
    te, bp = att_ref.shape
    n_pad = fhi_ref.shape[0]

    # {-1, 0, +1} selection matrix built from the edge endpoints.  It is exact
    # in bf16, so the two bf16 MXU matmuls below reproduce the f32 gather
    # (feat[dst] - feat[src]) to ~2^-18 relative error.
    node = lax.broadcasted_iota(jnp.int32, (te, n_pad), 1)
    src = idx_ref[:, 0:1]
    dst = idx_ref[:, 1:2]
    sel = ((node == dst).astype(jnp.float32)
           - (node == src).astype(jnp.float32)).astype(jnp.bfloat16)

    vec = (jnp.dot(sel, fhi_ref[...], preferred_element_type=jnp.float32)
           + jnp.dot(sel, flo_ref[...], preferred_element_type=jnp.float32))

    ax = vec[:, 0 * bp:1 * bp]
    ay = vec[:, 1 * bp:2 * bp]
    bx = vec[:, 2 * bp:3 * bp] + vec[:, 4 * bp:5 * bp]
    by = vec[:, 3 * bp:4 * bp] + vec[:, 5 * bp:6 * bp]
    att_ref[...] = _fuzzy_attention(ax, ay, bx, by, idx_ref[:, 2:3] > 0)


def _pregathered_kernel(vec_ref, prio_ref, att_ref):
    """Fallback: vec = feat[dst]-feat[src] was gathered outside the kernel.

    vec_ref: [6, TE, B_pad]; prio_ref: [TE, 1] int32; att_ref: [TE, B_pad].
    """
    ax = vec_ref[0].astype(jnp.float32)
    ay = vec_ref[1].astype(jnp.float32)
    bx = vec_ref[2].astype(jnp.float32) + vec_ref[4].astype(jnp.float32)
    by = vec_ref[3].astype(jnp.float32) + vec_ref[5].astype(jnp.float32)
    att_ref[...] = _fuzzy_attention(ax, ay, bx, by, prio_ref[...] > 0)


def ts_fuzzy_layer(src, dst, feat, etypes, *, max_tile_elems=1024 * 128,
                   fuse_gather=None, pregathered_dtype=jnp.float32):
    """Pallas implementation of TSFuzzyLayer.forward.

    src, dst: int32 [E] edge endpoints; feat: float [N, B, F] (F >= 6);
    etypes: int32 [E].  Returns attention [E, B, 1] float32.
    """
    E = int(src.shape[0])
    N, B, F = feat.shape
    assert F >= 6 and E >= 1

    B_pad = _round_up(B, 128)
    # Tile rows: ~max_tile_elems elements per tile (scales down when B > 128),
    # always >= 2 grid steps so both v7x TensorCores get work, 8-row granules
    # so edge padding stays minimal.
    max_rows = max(8, (max_tile_elems // B_pad) // 8 * 8)
    num_tiles = max(2, -(-E // max_rows))
    tile_e = _round_up(-(-E // num_tiles), 8)
    E_pad = tile_e * num_tiles

    prio = jnp.logical_or(etypes == 0, etypes == 4).astype(jnp.int32)    # [E]

    n_pad = _round_up(N, 128)
    if fuse_gather is None:
        # Fused path keeps the node features VMEM-resident and builds a
        # [tile_e, n_pad] selection matrix per tile -- only worth it while the
        # node table (and selection matrix) stay small.
        fuse_gather = (n_pad <= 512) and (24 * n_pad * B_pad <= (4 << 20))

    cparams = pltpu.CompilerParams(
        dimension_semantics=("parallel",),
        vmem_limit_bytes=32 * 1024 * 1024)

    if fuse_gather:
        f = jnp.transpose(feat[:, :, :6].astype(jnp.float32), (0, 2, 1))  # [N,6,B]
        f = jnp.pad(f, ((0, n_pad - N), (0, 0), (0, B_pad - B)))
        f = f.reshape(n_pad, 6 * B_pad)                                   # [N_pad, 6*B_pad]
        # bf16 hi/lo split so the in-kernel bf16 MXU gather is f32-exact.
        f_hi = f.astype(jnp.bfloat16)
        f_lo = (f - f_hi.astype(jnp.float32)).astype(jnp.bfloat16)

        idx = jnp.stack(
            (src.astype(jnp.int32), dst.astype(jnp.int32), prio), axis=1)  # [E,3]
        idx = jnp.pad(idx, ((0, E_pad - E), (0, 0)))

        att = pl.pallas_call(
            _fused_gather_kernel,
            out_shape=jax.ShapeDtypeStruct((E_pad, B_pad), jnp.float32),
            grid=(num_tiles,),
            in_specs=[
                pl.BlockSpec((tile_e, 3), lambda i: (i, 0)),
                pl.BlockSpec((n_pad, 6 * B_pad), lambda i: (0, 0)),  # resident
                pl.BlockSpec((n_pad, 6 * B_pad), lambda i: (0, 0)),  # resident
            ],
            out_specs=pl.BlockSpec((tile_e, B_pad), lambda i: (i, 0)),
            compiler_params=cparams,
        )(idx, f_hi, f_lo)
    else:
        # TODO(synk): for very large node tables the per-edge gather stays in
        # XLA; fusing it would need a data-dependent DMA-gather kernel.
        # (pregathered_dtype=jnp.bfloat16 halves this HBM intermediate on
        #  memory-bound v5e at a small accuracy cost; default keeps f32.)
        feat_t = jnp.transpose(feat[:, :, :6].astype(pregathered_dtype),
                               (2, 0, 1))                               # [6,N,B]
        vec_t = feat_t[:, dst, :] - feat_t[:, src, :]                   # [6,E,B]
        prio_col = prio[:, None]                                        # [E,1]
        if E_pad != E or B_pad != B:
            vec_t = jnp.pad(vec_t, ((0, 0), (0, E_pad - E), (0, B_pad - B)))
            prio_col = jnp.pad(prio_col, ((0, E_pad - E), (0, 0)))

        att = pl.pallas_call(
            _pregathered_kernel,
            out_shape=jax.ShapeDtypeStruct((E_pad, B_pad), jnp.float32),
            grid=(num_tiles,),
            in_specs=[
                pl.BlockSpec((6, tile_e, B_pad), lambda i: (0, i, 0)),
                pl.BlockSpec((tile_e, 1), lambda i: (i, 0)),
            ],
            out_specs=pl.BlockSpec((tile_e, B_pad), lambda i: (i, 0)),
            compiler_params=cparams,
        )(vec_t, prio_col)

    return att[:E, :B, None]                                            # [E,B,1]


# ---------------- pure-JAX reference (for verification only) ----------------
def ts_fuzzy_reference(src, dst, feat, etypes):
    vec = (feat[dst] - feat[src])[:, :, :6].astype(jnp.float32)
    alpha = vec[:, :, :2]
    beta = vec[:, :, 2:4] + vec[:, :, 4:6]
    x1 = jnp.linalg.norm(alpha, axis=2)
    v1, v2 = -alpha, beta
    dot = jnp.sum(v1 * v2, axis=2)
    nrm = jnp.sqrt(jnp.maximum(jnp.sum(v1 * v1, 2) * jnp.sum(v2 * v2, 2), 1e-12))
    cos_v = jnp.clip(dot / nrm, -1.0 + 1e-8, 1.0 - 1e-8)
    x2 = jnp.degrees(jnp.arccos(cos_v))

    def g(x, m, s):
        return jnp.exp(-((x - m) ** 2) / (2 * s * s))

    l1 = [g(x1, m, X1_SIGMA) for m in X1_MEANS]
    l2 = [g(x2, m, X2_SIGMA) for m in X2_MEANS]
    truth = jnp.stack([jnp.minimum(l1[i], l2[j])
                       for i in range(3) for j in range(3)], axis=2)
    prem = jnp.stack((x1, x2), axis=2)                                  # [E,B,2]
    cons = prem @ jnp.asarray(SUB_SYSTEMS_MAT) + jnp.asarray(SUB_SYSTEMS_BIAS)
    att = jnp.sum(truth * cons, axis=2) / jnp.sum(truth, axis=2)
    prio = jnp.logical_or(etypes == 0, etypes == 4)
    att = jnp.where(prio[:, None], 1.0, att)
    return att[:, :, None]


if __name__ == "__main__":
    key = jax.random.PRNGKey(0)
    N, B, F, E = 6, 128, 6, 20          # nodes, batch, feat dim, edges
    k1, k2, k3, k4 = jax.random.split(key, 4)
    feat = jax.random.normal(k1, (N, B, F), dtype=jnp.float32)
    src = jax.random.randint(k2, (E,), 0, N, dtype=jnp.int32)
    dst = jax.random.randint(k3, (E,), 0, N, dtype=jnp.int32)
    etypes = jax.random.randint(k4, (E,), 0, 6, dtype=jnp.int32)

    ref = ts_fuzzy_reference(src, dst, feat, etypes)

    # Fused-gather path (default for small node tables).
    att_fused = jax.block_until_ready(ts_fuzzy_layer(src, dst, feat, etypes))
    assert att_fused.shape == (E, B, 1), att_fused.shape
    err_f = float(jnp.max(jnp.abs(att_fused - ref)))
    assert np.isfinite(err_f) and err_f < 1e-2, err_f

    # Pre-gathered fallback path (used automatically for very large N).
    att_pre = jax.block_until_ready(
        ts_fuzzy_layer(src, dst, feat, etypes, fuse_gather=False))
    assert att_pre.shape == (E, B, 1), att_pre.shape
    err_p = float(jnp.max(jnp.abs(att_pre - ref)))
    assert np.isfinite(err_p) and err_p < 1e-2, err_p

    print("KERNEL_OK")
</pallas_src>

<mosaic_0001>
module attributes {stable_mosaic.version = 11 : i64} {
  func.func @_fused_gather_kernel(%arg0: i32, %arg1: memref<16x3xi32, #tpu.memory_space<vmem>>, %arg2: memref<128x768xbf16, #tpu.memory_space<vmem>>, %arg3: memref<128x768xbf16, #tpu.memory_space<vmem>>, %arg4: memref<16x128xf32, #tpu.memory_space<vmem>>) attributes {dimension_semantics = [#tpu.dimension_semantics<parallel>], iteration_bounds = array<i64: 2>, scalar_prefetch = 0 : i64, scratch_operands = 0 : i64, tpu.core_type = #tpu.core_type<tc>, window_params = [{transform_indices = @transform_0, window_bounds = array<i64: 16, 3>}, {pipeline_mode = #tpu.pipeline_mode<synchronous>, transform_indices = @transform_1, window_bounds = array<i64: 128, 768>}, {pipeline_mode = #tpu.pipeline_mode<synchronous>, transform_indices = @transform_2, window_bounds = array<i64: 128, 768>}, {transform_indices = @transform_3, window_bounds = array<i64: 16, 128>}]} {
    %0 = tpu.iota {dimensions = array<i32: 1>} : vector<16x128xi32>
    %c0 = arith.constant 0 : index
    %c0_0 = arith.constant 0 : index
    %1 = vector.load %arg1[%c0, %c0_0] : memref<16x3xi32, #tpu.memory_space<vmem>>, vector<16x1xi32>
    %c0_1 = arith.constant 0 : index
    %c1 = arith.constant 1 : index
    %2 = vector.load %arg1[%c0_1, %c1] : memref<16x3xi32, #tpu.memory_space<vmem>>, vector<16x1xi32>
    %3 = vector.broadcast %2 : vector<16x1xi32> to vector<16x128xi32>
    %4 = arith.cmpi eq, %0, %3 : vector<16x128xi32>
    %5 = arith.extui %4 : vector<16x128xi1> to vector<16x128xi32>
    %6 = arith.sitofp %5 : vector<16x128xi32> to vector<16x128xf32>
    %7 = vector.broadcast %1 : vector<16x1xi32> to vector<16x128xi32>
    %8 = arith.cmpi eq, %0, %7 : vector<16x128xi32>
    %9 = arith.extui %8 : vector<16x128xi1> to vector<16x128xi32>
    %10 = arith.sitofp %9 : vector<16x128xi32> to vector<16x128xf32>
    %11 = arith.subf %6, %10 : vector<16x128xf32>
    %12 = arith.truncf %11 : vector<16x128xf32> to vector<16x128xbf16>
    %c0_2 = arith.constant 0 : index
    %c0_3 = arith.constant 0 : index
    %13 = vector.load %arg2[%c0_2, %c0_3] : memref<128x768xbf16, #tpu.memory_space<vmem>>, vector<128x768xbf16>
    %cst = arith.constant dense<0.000000e+00> : vector<16x768xf32>
    %14 = tpu.matmul %12, %13, %cst {dimension_numbers = #tpu.dot_dimension_numbers<[1], [0], [0], [1], [0, 0, 1, 1], [], []>} : vector<16x128xbf16>, vector<128x768xbf16>, vector<16x768xf32> -> vector<16x768xf32>
    %c0_4 = arith.constant 0 : index
    %c0_5 = arith.constant 0 : index
    %15 = vector.load %arg3[%c0_4, %c0_5] : memref<128x768xbf16, #tpu.memory_space<vmem>>, vector<128x768xbf16>
    %cst_6 = arith.constant dense<0.000000e+00> : vector<16x768xf32>
    %16 = tpu.matmul %12, %15, %cst_6 {dimension_numbers = #tpu.dot_dimension_numbers<[1], [0], [0], [1], [0, 0, 1, 1], [], []>} : vector<16x128xbf16>, vector<128x768xbf16>, vector<16x768xf32> -> vector<16x768xf32>
    %17 = arith.addf %14, %16 : vector<16x768xf32>
    %18 = vector.extract_strided_slice %17 {offsets = [0, 0], sizes = [16, 128], strides = [1, 1]} : vector<16x768xf32> to vector<16x128xf32>
    %19 = vector.extract_strided_slice %17 {offsets = [0, 128], sizes = [16, 128], strides = [1, 1]} : vector<16x768xf32> to vector<16x128xf32>
    %20 = vector.extract_strided_slice %17 {offsets = [0, 256], sizes = [16, 128], strides = [1, 1]} : vector<16x768xf32> to vector<16x128xf32>
    %21 = vector.extract_strided_slice %17 {offsets = [0, 512], sizes = [16, 128], strides = [1, 1]} : vector<16x768xf32> to vector<16x128xf32>
    %22 = arith.addf %20, %21 : vector<16x128xf32>
    %23 = vector.extract_strided_slice %17 {offsets = [0, 384], sizes = [16, 128], strides = [1, 1]} : vector<16x768xf32> to vector<16x128xf32>
    %24 = vector.extract_strided_slice %17 {offsets = [0, 640], sizes = [16, 128], strides = [1, 1]} : vector<16x768xf32> to vector<16x128xf32>
    %25 = arith.addf %23, %24 : vector<16x128xf32>
    %c0_7 = arith.constant 0 : index
    %c2 = arith.constant 2 : index
    %26 = vector.load %arg1[%c0_7, %c2] : memref<16x3xi32, #tpu.memory_space<vmem>>, vector<16x1xi32>
    %c0_i32 = arith.constant 0 : i32
    %27 = vector.broadcast %c0_i32 : i32 to vector<16x1xi32>
    %28 = arith.cmpi sgt, %26, %27 : vector<16x1xi32>
    %29 = arith.mulf %18, %18 : vector<16x128xf32>
    %30 = arith.mulf %19, %19 : vector<16x128xf32>
    %31 = arith.addf %29, %30 : vector<16x128xf32>
    %32 = math.sqrt %31 : vector<16x128xf32>
    %33 = arith.mulf %22, %22 : vector<16x128xf32>
    %34 = arith.mulf %25, %25 : vector<16x128xf32>
    %35 = arith.addf %33, %34 : vector<16x128xf32>
    %36 = arith.mulf %18, %22 : vector<16x128xf32>
    %37 = arith.mulf %19, %25 : vector<16x128xf32>
    %38 = arith.addf %36, %37 : vector<16x128xf32>
    %cst_8 = arith.constant 0.000000e+00 : f32
    %39 = vector.broadcast %cst_8 : f32 to vector<16x128xf32>
    %40 = arith.subf %39, %38 : vector<16x128xf32>
    %41 = arith.mulf %31, %35 : vector<16x128xf32>
    %cst_9 = arith.constant 9.99999996E-13 : f32
    %42 = vector.broadcast %cst_9 : f32 to vector<16x128xf32>
    %43 = arith.maximumf %41, %42 : vector<16x128xf32>
    %44 = math.rsqrt %43 : vector<16x128xf32>
    %45 = arith.mulf %40, %44 : vector<16x128xf32>
    %46 = math.absf %45 : vector<16x128xf32>
    %cst_10 = arith.constant -0.0723354146 : f32
    %47 = vector.broadcast %cst_10 : f32 to vector<16x128xf32>
    %48 = arith.mulf %47, %46 : vector<16x128xf32>
    %cst_11 = arith.constant 0.382168025 : f32
    %49 = vector.broadcast %cst_11 : f32 to vector<16x128xf32>
    %50 = arith.addf %48, %49 : vector<16x128xf32>
    %51 = arith.mulf %50, %46 : vector<16x128xf32>
    %cst_12 = arith.constant -0.979077458 : f32
    %52 = vector.broadcast %cst_12 : f32 to vector<16x128xf32>
    %53 = arith.addf %51, %52 : vector<16x128xf32>
    %54 = arith.mulf %53, %46 : vector<16x128xf32>
    %cst_13 = arith.constant 1.76997435 : f32
    %55 = vector.broadcast %cst_13 : f32 to vector<16x128xf32>
    %56 = arith.addf %54, %55 : vector<16x128xf32>
    %57 = arith.mulf %56, %46 : vector<16x128xf32>
    %cst_14 = arith.constant -2.87477589 : f32
    %58 = vector.broadcast %cst_14 : f32 to vector<16x128xf32>
    %59 = arith.addf %57, %58 : vector<16x128xf32>
    %60 = arith.mulf %59, %46 : vector<16x128xf32>
    %cst_15 = arith.constant 5.098120e+00 : f32
    %61 = vector.broadcast %cst_15 : f32 to vector<16x128xf32>
    %62 = arith.addf %60, %61 : vector<16x128xf32>
    %63 = arith.mulf %62, %46 : vector<16x128xf32>
    %cst_16 = arith.constant -12.2956057 : f32
    %64 = vector.broadcast %cst_16 : f32 to vector<16x128xf32>
    %65 = arith.addf %63, %64 : vector<16x128xf32>
    %66 = arith.mulf %65, %46 : vector<16x128xf32>
    %cst_17 = arith.constant 9.000000e+01 : f32
    %67 = vector.broadcast %cst_17 : f32 to vector<16x128xf32>
    %68 = arith.addf %66, %67 : vector<16x128xf32>
    %cst_18 = arith.constant 1.000000e+00 : f32
    %69 = vector.broadcast %cst_18 : f32 to vector<16x128xf32>
    %70 = arith.subf %69, %46 : vector<16x128xf32>
    %cst_19 = arith.constant 0.000000e+00 : f32
    %71 = vector.broadcast %cst_19 : f32 to vector<16x128xf32>
    %72 = arith.maximumf %70, %71 : vector<16x128xf32>
    %73 = math.sqrt %72 : vector<16x128xf32>
    %74 = arith.mulf %73, %68 : vector<16x128xf32>
    %cst_20 = arith.constant 0.000000e+00 : f32
    %75 = vector.broadcast %cst_20 : f32 to vector<16x128xf32>
    %76 = arith.cmpf olt, %45, %75 : vector<16x128xf32>
    %cst_21 = arith.constant 1.800000e+02 : f32
    %77 = vector.broadcast %cst_21 : f32 to vector<16x128xf32>
    %78 = arith.subf %77, %74 : vector<16x128xf32>
    %79 = arith.select %76, %78, %74 : vector<16x128xi1>, vector<16x128xf32>
    %cst_22 = arith.constant -0.888888895 : f32
    %80 = vector.broadcast %cst_22 : f32 to vector<16x128xf32>
    %81 = arith.mulf %31, %80 : vector<16x128xf32>
    %82 = math.exp %81 : vector<16x128xf32>
    %cst_23 = arith.constant 2.000000e+00 : f32
    %83 = vector.broadcast %cst_23 : f32 to vector<16x128xf32>
    %84 = arith.subf %32, %83 : vector<16x128xf32>
    %85 = arith.mulf %84, %84 : vector<16x128xf32>
    %cst_24 = arith.constant -0.888888895 : f32
    %86 = vector.broadcast %cst_24 : f32 to vector<16x128xf32>
    %87 = arith.mulf %85, %86 : vector<16x128xf32>
    %88 = math.exp %87 : vector<16x128xf32>
    %cst_25 = arith.constant 4.000000e+00 : f32
    %89 = vector.broadcast %cst_25 : f32 to vector<16x128xf32>
    %90 = arith.subf %32, %89 : vector<16x128xf32>
    %91 = arith.mulf %90, %90 : vector<16x128xf32>
    %cst_26 = arith.constant -0.888888895 : f32
    %92 = vector.broadcast %cst_26 : f32 to vector<16x128xf32>
    %93 = arith.mulf %91, %92 : vector<16x128xf32>
    %94 = math.exp %93 : vector<16x128xf32>
    %95 = arith.mulf %79, %79 : vector<16x128xf32>
    %cst_27 = arith.constant -5.55555569E-4 : f32
    %96 = vector.broadcast %cst_27 : f32 to vector<16x128xf32>
    %97 = arith.mulf %95, %96 : vector<16x128xf32>
    %98 = math.exp %97 : vector<16x128xf32>
    %cst_28 = arith.constant 9.000000e+01 : f32
    %99 = vector.broadcast %cst_28 : f32 to vector<16x128xf32>
    %100 = arith.subf %79, %99 : vector<16x128xf32>
    %101 = arith.mulf %100, %100 : vector<16x128xf32>
    %cst_29 = arith.constant -5.55555569E-4 : f32
    %102 = vector.broadcast %cst_29 : f32 to vector<16x128xf32>
    %103 = arith.mulf %101, %102 : vector<16x128xf32>
    %104 = math.exp %103 : vector<16x128xf32>
    %cst_30 = arith.constant 1.800000e+02 : f32
    %105 = vector.broadcast %cst_30 : f32 to vector<16x128xf32>
    %106 = arith.subf %79, %105 : vector<16x128xf32>
    %107 = arith.mulf %106, %106 : vector<16x128xf32>
    %cst_31 = arith.constant -5.55555569E-4 : f32
    %108 = vector.broadcast %cst_31 : f32 to vector<16x128xf32>
    %109 = arith.mulf %107, %108 : vector<16x128xf32>
    %110 = math.exp %109 : vector<16x128xf32>
    %111 = arith.minimumf %82, %98 : vector<16x128xf32>
    %112 = arith.minimumf %82, %104 : vector<16x128xf32>
    %113 = arith.minimumf %82, %110 : vector<16x128xf32>
    %114 = arith.minimumf %88, %98 : vector<16x128xf32>
    %115 = arith.minimumf %88, %104 : vector<16x128xf32>
    %116 = arith.minimumf %88, %110 : vector<16x128xf32>
    %117 = arith.minimumf %94, %98 : vector<16x128xf32>
    %118 = arith.minimumf %94, %104 : vector<16x128xf32>
    %119 = arith.minimumf %94, %110 : vector<16x128xf32>
    %120 = arith.addf %111, %112 : vector<16x128xf32>
    %121 = arith.addf %113, %114 : vector<16x128xf32>
    %122 = arith.addf %120, %121 : vector<16x128xf32>
    %123 = arith.addf %115, %116 : vector<16x128xf32>
    %124 = arith.addf %117, %118 : vector<16x128xf32>
    %125 = arith.addf %123, %124 : vector<16x128xf32>
    %126 = arith.addf %122, %125 : vector<16x128xf32>
    %127 = arith.addf %126, %119 : vector<16x128xf32>
    %cst_32 = arith.constant 1.000000e-30 : f32
    %128 = vector.broadcast %cst_32 : f32 to vector<16x128xf32>
    %129 = arith.maximumf %127, %128 : vector<16x128xf32>
    %cst_33 = arith.constant 2.000000e-01 : f32
    %130 = vector.broadcast %cst_33 : f32 to vector<16x128xf32>
    %131 = arith.mulf %130, %32 : vector<16x128xf32>
    %cst_34 = arith.constant 1.000000e+00 : f32
    %132 = vector.broadcast %cst_34 : f32 to vector<16x128xf32>
    %133 = arith.subf %132, %131 : vector<16x128xf32>
    %cst_35 = arith.constant 1.000000e-01 : f32
    %134 = vector.broadcast %cst_35 : f32 to vector<16x128xf32>
    %135 = arith.mulf %134, %32 : vector<16x128xf32>
    %cst_36 = arith.constant 0.699999988 : f32
    %136 = vector.broadcast %cst_36 : f32 to vector<16x128xf32>
    %137 = arith.subf %136, %135 : vector<16x128xf32>
    %cst_37 = arith.constant 2.000000e-03 : f32
    %138 = vector.broadcast %cst_37 : f32 to vector<16x128xf32>
    %139 = arith.mulf %138, %79 : vector<16x128xf32>
    %140 = arith.subf %137, %139 : vector<16x128xf32>
    %cst_38 = arith.constant -5.000000e-02 : f32
    %141 = vector.broadcast %cst_38 : f32 to vector<16x128xf32>
    %142 = arith.mulf %141, %32 : vector<16x128xf32>
    %cst_39 = arith.constant 1.000000e-03 : f32
    %143 = vector.broadcast %cst_39 : f32 to vector<16x128xf32>
    %144 = arith.mulf %143, %79 : vector<16x128xf32>
    %145 = arith.subf %142, %144 : vector<16x128xf32>
    %cst_40 = arith.constant 0.00999999977 : f32
    %146 = vector.broadcast %cst_40 : f32 to vector<16x128xf32>
    %147 = arith.mulf %146, %32 : vector<16x128xf32>
    %cst_41 = arith.constant 7.000000e-02 : f32
    %148 = vector.broadcast %cst_41 : f32 to vector<16x128xf32>
    %149 = arith.subf %148, %147 : vector<16x128xf32>
    %cst_42 = arith.constant 2.000000e-04 : f32
    %150 = vector.broadcast %cst_42 : f32 to vector<16x128xf32>
    %151 = arith.mulf %150, %79 : vector<16x128xf32>
    %152 = arith.subf %149, %151 : vector<16x128xf32>
    %cst_43 = arith.constant 5.500000e-02 : f32
    %153 = vector.broadcast %cst_43 : f32 to vector<16x128xf32>
    %154 = arith.mulf %153, %32 : vector<16x128xf32>
    %cst_44 = arith.constant 2.225000e-01 : f32
    %155 = vector.broadcast %cst_44 : f32 to vector<16x128xf32>
    %156 = arith.subf %155, %154 : vector<16x128xf32>
    %cst_45 = arith.constant 8.000000e-04 : f32
    %157 = vector.broadcast %cst_45 : f32 to vector<16x128xf32>
    %158 = arith.mulf %157, %79 : vector<16x128xf32>
    %159 = arith.addf %156, %158 : vector<16x128xf32>
    %160 = arith.mulf %111, %133 : vector<16x128xf32>
    %161 = arith.mulf %112, %140 : vector<16x128xf32>
    %162 = arith.addf %160, %161 : vector<16x128xf32>
    %163 = arith.addf %113, %114 : vector<16x128xf32>
    %164 = arith.addf %163, %115 : vector<16x128xf32>
    %165 = arith.mulf %164, %145 : vector<16x128xf32>
    %166 = arith.addf %162, %165 : vector<16x128xf32>
    %cst_46 = arith.constant 2.750000e-01 : f32
    %167 = vector.broadcast %cst_46 : f32 to vector<16x128xf32>
    %168 = arith.mulf %167, %113 : vector<16x128xf32>
    %cst_47 = arith.constant 4.000000e-01 : f32
    %169 = vector.broadcast %cst_47 : f32 to vector<16x128xf32>
    %170 = arith.mulf %169, %114 : vector<16x128xf32>
    %171 = arith.addf %168, %170 : vector<16x128xf32>
    %cst_48 = arith.constant 2.500000e-01 : f32
    %172 = vector.broadcast %cst_48 : f32 to vector<16x128xf32>
    %173 = arith.mulf %172, %115 : vector<16x128xf32>
    %174 = arith.addf %171, %173 : vector<16x128xf32>
    %175 = arith.addf %166, %174 : vector<16x128xf32>
    %176 = arith.addf %116, %118 : vector<16x128xf32>
    %177 = arith.mulf %176, %152 : vector<16x128xf32>
    %178 = arith.addf %175, %177 : vector<16x128xf32>
    %179 = arith.mulf %117, %159 : vector<16x128xf32>
    %180 = arith.addf %178, %179 : vector<16x128xf32>
    %181 = tpu.reciprocal %129 {approx = true} : vector<16x128xf32> -> vector<16x128xf32>
    %182 = arith.mulf %180, %181 : vector<16x128xf32>
    %cst_49 = arith.constant 1.000000e+00 : f32
    %183 = vector.shape_cast %28 : vector<16x1xi1> to vector<16x1xi1>
    %184 = vector.broadcast %183 : vector<16x1xi1> to vector<16x128xi1>
    %185 = vector.broadcast %cst_49 : f32 to vector<16x128xf32>
    %186 = arith.select %184, %185, %182 : vector<16x128xi1>, vector<16x128xf32>
    %c0_50 = arith.constant 0 : index
    %c0_51 = arith.constant 0 : index
    %187 = vector.load %arg4[%c0_50, %c0_51] : memref<16x128xf32, #tpu.memory_space<vmem>>, vector<16x128xf32>
    tpu.vector_store %arg4[%c0_50, %c0_51], %186 {strides = array<i32>} : memref<16x128xf32, #tpu.memory_space<vmem>>, vector<16x128xf32>,
    return
  }
  func.func @transform_0(%arg0: i32) -> (i32, i32) {
    %c0_i32 = arith.constant 0 : i32
    %c0_i32_0 = arith.constant 0 : i32
    return %arg0, %c0_i32 : i32, i32
  }
  func.func @transform_1(%arg0: i32) -> (i32, i32) {
    %c0_i32 = arith.constant 0 : i32
    %c0_i32_0 = arith.constant 0 : i32
    %c0_i32_1 = arith.constant 0 : i32
    return %c0_i32, %c0_i32_0 : i32, i32
  }
  func.func @transform_2(%arg0: i32) -> (i32, i32) {
    %c0_i32 = arith.constant 0 : i32
    %c0_i32_0 = arith.constant 0 : i32
    %c0_i32_1 = arith.constant 0 : i32
    return %c0_i32, %c0_i32_0 : i32, i32
  }
  func.func @transform_3(%arg0: i32) -> (i32, i32) {
    %c0_i32 = arith.constant 0 : i32
    %c0_i32_0 = arith.constant 0 : i32
    return %arg0, %c0_i32 : i32, i32
  }
}

</mosaic_0001>

<bundles_post_ra>
// kernel: tpu_custom_call.1
= control target key start
LH: loop header
LB: loop body
LE: loop exit
PB: predicated region body
PF: predicated region fallthrough
CT: control target
= control target key end

     0   :  { %8 = vsyncpa [#allocation3], 0  ;;  %s2242_s0 = inlined_call_operand.vmem [shape: s32[32,3], index: 0, kind: input, shape index: {}]   ;;  %s2243_s1 = inlined_call_operand.hbm [shape: bf16[128,768], index: 1, kind: input, shape index: {}]   ;;  %s2244_s2 = inlined_call_operand.hbm [shape: bf16[128,768], index: 2, kind: input, shape index: {}]   ;;  %s2245_s3 = inlined_call_operand.hbm [shape: f32[32,128], index: 3, kind: output, shape index: {}]  }
   0x1   :  { %9 = vsyncpa [#allocation6], 0 }
   0x2   :  { %10 = vsyncpa [#allocation4], 0 }
   0x3   :  { %12 = vsyncpa [#allocation4 + $0x1], 0  ;;  %s1980_s12 = smov 0   ;;  %s1982_s13 = smov 0  }
   0x4   :  { %s1984_s14 = smov 0   ;;  %s1986_s15 = smov 0  }
   0x5 LB: > { %s2001_s16 = sadd.s32 4294967295, %s1947_s15   ;;  %s1446_s17 = sadd.s32 4294967294, %s1947_s15   ;;  %s1947_s15 = sphi %s1986_s15, %s2259_s15   ;;  %s1943_s14 = sphi %s1984_s14, %s2258_s14   ;;  %s1939_s13 = sphi %s1982_s13, %s2257_s13   ;;  %s1935_s12 = sphi %s1980_s12, %s2256_s12  }
   0x6   : > { %s2005_s18 = sadd.s32 1, %s1947_s15   ;;  %s93_s19 = sadd.s32 1, %s1943_s14 }
   0x7   : > { %s90_s20 = ssub.s32 %s1947_s15, %s2005_s18  ;;  %p103_p0 = scmp.ne.s32.totalorder %s1943_s14, %s1939_s13 }
   0x8   : > { %p91_p1 = scmp.eq.s32.totalorder %s90_s20, 0  ;;  %p104_p2 = scmp.eq.s32.totalorder %s2001_s16, 1 }
   0x9   : > { %p109_p3 = scmp.ne.s32.totalorder %s1939_s13, %s1935_s12  ;;  %p110_p4 = scmp.eq.s32.totalorder %s1446_s17, 1 }
   0xa   : > { %s2016_s21 = scalar_select %p91_p1, %s1943_s14, %s93_s19  }
   0xb   : > { %p2018_p5 = por %p104_p2, %p103_p0  ;;  %p2022_p6 = por %p110_p4, %p109_p3 }
   0xc   : > { %p1447_p7 = scmp.ge.s32.totalorder %s1947_s15, 1  ;;  %p117_p8 = scmp.lt.s32.totalorder %s1947_s15, 3 }
   0xd   : > { %s2248_s23 = scalar_select %p2022_p6, 1, 0 }
   0xe   : > { %p2246_p9 = scmp.eq.s32.totalorder %s2001_s16, 0  ;;  %p2029_p10 = pnand %p1447_p7, %p117_p8 }
   0xf   : > { %s1949_s25 = smov [#allocation2]   ;;  %s1950_s28 = smov [#allocation5]  }
  0x10   : > { %s129_s26 = sshll.u32 %s1949_s25, 4  ;;  %p1581_p11 = pneg %p2029_p10  ;;  %s130_s26 = int_to_ptr.vmem [resolvable:$true] %s129_s26 }
  0x11   : > { %s142_s29 = sshll.u32 %s1950_s28, 4  ;;  %s1838_s30 = scalar_lea.vmem %s130_s26, 6144  ;;  %s143_s29 = int_to_ptr.vmem [resolvable:$true] %s142_s29 }
  0x12   : > { %p2037_p12 = pnand %p2246_p9, %p1581_p11  ;;  %p1839_p0 = scmp.ne.s32.totalorder %s130_s26, %s1838_s30 }
  0x13   : > { %p1846_p3 = scmp.lt.s32.totalorder %s130_s26, %s130_s26  ;;  %p1847_p4 = scmp.lt.s32.totalorder %s1838_s30, %s1838_s30 }
  0x14   : > { %p1829_p13 = pneg %p2037_p12 }
  0x15   : > { %p1848_p7 = por %p1847_p4, %p1846_p3 }
  0x16   : > { %p1841_p1 = pnand %p1839_p0, %p1829_p13 }
  0x18   : > { %p1842_p2 = pneg %p1841_p1 }
  0x1a   : > { %p1849_p8 = pnand %p1848_p7, %p1842_p2 }
  0x1c   : > { %1852 = shalt.err (!%p1849_p8)
}
  0x1d   : > { %s1951_s4 = smov 384   ;;  %s1952_s5 = smov 24  }
  0x1e   : > { %1584 = dma.hbm_to_vmem [thread:$0]  (!%p2037_p12), %s2243_s1, 6144, %s130_s26, [#allocation3], %s1951_s4, %s1951_s4, %s1952_s5  }
  0x1f   : > { %s1864_s8 = scalar_lea.vmem %s143_s29, 6144  ;;  %p1872_p9 = scmp.lt.s32.totalorder %s143_s29, %s143_s29 }
  0x20   : > { %p1865_p11 = scmp.ne.s32.totalorder %s143_s29, %s1864_s8  ;;  %p1873_p6 = scmp.lt.s32.totalorder %s1864_s8, %s1864_s8 }
  0x22   : > { %p1867_p0 = pnand %p1865_p11, %p1829_p13  ;;  %p1874_p3 = por %p1873_p6, %p1872_p9 }
  0x24   : > { %p1868_p1 = pneg %p1867_p0 }
  0x26   : > { %p1875_p2 = pnand %p1874_p3, %p1868_p1 }
  0x28   : > { %1878 = shalt.err (!%p1875_p2)
}
  0x29   : > { %1587 = dma.hbm_to_vmem [thread:$0]  (!%p2037_p12), %s2244_s2, 6144, %s143_s29, [#allocation6], %s1951_s4, %s1951_s4, %s1952_s5  }
  0x2a   : > { %167 = sbr.rel (%p2029_p10) target bundleno = 586 (0x24a), region = 32  ;;  %p2251_p4 = scmp.eq.s32.totalorder (!%p2029_p10), %s2001_s16, 0 }
  0x2f   : > { %1922 = dma.done.wait (%p2251_p4), [#allocation3], 6144   ;;  %p2252_p13 = pmov %p2251_p4 }
  0x30   : > { %p2253_p7 = pmov %p2251_p4 }
  0x31   : > { %1924 = vsyncadd (%p2252_p13), [#allocation3], 4294961152 }
  0x32   : > { %1926 = dma.done.wait (%p2253_p7), [#allocation6], 6144   ;;  %p2254_p6 = pmov %p2251_p4 }
  0x33   : > { %s1455_s11 = sshll.u32 %s2001_s16, 1  ;;  %v1953_v0 = vmov 0   ;;  %v1954_v1 = vmov 1   ;;  %v1643_v4 = vld [vmem:[#allocation5 + $0x154] ss:$24 sps:$4 sm:$0xff]   ;;  %v203_v38 = vlaneseq  ;;  %v1955_v42 = vmov 0.0  }
  0x34   : > { %1928 = vsyncadd (%p2254_p6), [#allocation6], 4294961152  ;;  %1640 = vset.pattern.permute.xlu1 %v1953_v0  ;;  %1639 = vset.pattern.permute.xlu0 %v1954_v1  ;;  %p196_p9 = scmp.lt.s32.totalorder %s1455_s11, 3  ;;  %v1645_v5 = vld [vmem:[#allocation5 + $0x15c] ss:$24 sps:$4 sm:$0xff]   ;;  %s192_s25 = sand.u32 1, %s1939_s13  }
  0x35   : > { %602 = vmatprep.mubr.bf16.mxu0 %v1953_v0  ;;  %645 = vmatprep.mubr.bf16.mxu1 %v1953_v0  ;;  %v1647_v6 = vld [vmem:[#allocation5 + $0x150] ss:$24 sps:$4 sm:$0xff]   ;;  %v1649_v8 = vld [vmem:[#allocation5 + $0x124] ss:$24 sps:$4 sm:$0xff]   ;;  %v1653_v10 = vld [vmem:[#allocation5 + $0x120] ss:$24 sps:$4 sm:$0xff]  }
  0x36   : > { %s2261_s11 = smov (!%p196_p9, %s1455_s11), 3  ;;  %570 = vmatprep.subr.bf16.mxu0 %v1643_v4  ;;  %v1648_v7 = vld [vmem:[#allocation5 + $0x158] ss:$24 sps:$4 sm:$0xff]   ;;  %613 = vmatprep.subr.bf16.mxu1 %v1645_v5  ;;  %v1651_v9 = vld [vmem:[#allocation5 + $0x12c] ss:$24 sps:$4 sm:$0xff]   ;;  %v204_v39 = vand.u32 127, %v203_v38 }
  0x37   : > { %s1456_s17 = sshll.u32 %s2261_s11, 3  ;;  %571 = vmatpush1.bf16.msra.mxu0 %v1647_v6  ;;  %v1654_v11 = vld [vmem:[#allocation5 + $0x128] ss:$24 sps:$4 sm:$0xff]   ;;  %614 = vmatpush1.bf16.msra.mxu1 %v1648_v7  ;;  %v1655_v12 = vld [vmem:[#allocation5 + $0xf4] ss:$24 sps:$4 sm:$0xff]   ;;  %s1454_s26 = sshll.u32 %s192_s25, 4 }
  0x38   : > { %s199_s24 = scalar_lea.vmem %s2242_s0, %s1456_s17  ;;  %572 = vmatprep.subr.bf16.mxu0 %v1649_v8  ;;  %615 = vmatprep.subr.bf16.mxu1 %v1651_v9  ;;  %v1657_v13 = vld [vmem:[#allocation5 + $0xfc] ss:$24 sps:$4 sm:$0xff]   ;;  %v1659_v14 = vld [vmem:[#allocation5 + $0xf0] ss:$24 sps:$4 sm:$0xff]   ;;  %v1663_v17 = vld [vmem:[#allocation5 + $0xcc] ss:$24 sps:$4 sm:$0xff]  }
  0x39   : > { %v2076_v2 = vld [vmem:[%s199_s24] sm:$0xff]  ;;  %v2078_v3 = vld [vmem:[%s199_s24 + $0x8] sm:$0xff]  ;;  %v1660_v16 = vld [vmem:[#allocation5 + $0xf8] ss:$24 sps:$4 sm:$0xff]   ;;  %s194_s27 = scalar_lea.vmem [#allocation7], %s1454_s26  ;;  %s1570_s29 = sshll.u32 %s2001_s16, 8 }
  0x3a   : > { %220 = vperm.xlu1 %1640, %v2076_v2   ;;  %208 = vperm.xlu0 %1639, %v2076_v2   ;;  %v1661_v15 = vld [vmem:[#allocation5 + $0xc4] ss:$24 sps:$4 sm:$0xff]   ;;  %v1665_v18 = vld [vmem:[#allocation5 + $0xc0] ss:$24 sps:$4 sm:$0xff]   ;;  %v1667_v19 = vld [vmem:[#allocation5 + $0x94] ss:$24 sps:$4 sm:$0xff]   ;;  %s2198_s5 = scalar_lea.hbm %s2245_s3, %s1570_s29 }
  0x3b   : > { %573 = vmatpush1.bf16.msra.mxu0 %v1653_v10  ;;  %616 = vmatpush1.bf16.msra.mxu1 %v1654_v11  ;;  %v1666_v20 = vld [vmem:[#allocation5 + $0xc8] ss:$24 sps:$4 sm:$0xff]   ;;  %v1669_v21 = vld [vmem:[#allocation5 + $0x9c] ss:$24 sps:$4 sm:$0xff]   ;;  %v1672_v24 = vld [vmem:[#allocation5 + $0x98] ss:$24 sps:$4 sm:$0xff]  }
  0x3c   : > { %574 = vmatprep.subr.bf16.mxu0 %v1655_v12  ;;  %617 = vmatprep.subr.bf16.mxu1 %v1657_v13  ;;  %v1671_v22 = vld [vmem:[#allocation5 + $0x90] ss:$24 sps:$4 sm:$0xff]   ;;  %v1673_v23 = vld [vmem:[#allocation5 + $0x64] ss:$24 sps:$4 sm:$0xff]   ;;  %v1677_v26 = vld [vmem:[#allocation5 + $0x60] ss:$24 sps:$4 sm:$0xff]  }
  0x3d   : > { %v1675_v25 = vld [vmem:[#allocation5 + $0x6c] ss:$24 sps:$4 sm:$0xff]   ;;  %v1678_v28 = vld [vmem:[#allocation5 + $0x68] ss:$24 sps:$4 sm:$0xff]   ;;  %v1681_v29 = vld [vmem:[#allocation5 + $0x3c] ss:$24 sps:$4 sm:$0xff]  }
  0x3e   : > { %223 = vperm.xlu1 %1640, %v2078_v3   ;;  %211 = vperm.xlu0 %1639, %v2078_v3   ;;  %v1679_v27 = vld [vmem:[#allocation5 + $0x34] ss:$24 sps:$4 sm:$0xff]   ;;  %v1683_v30 = vld [vmem:[#allocation5 + $0x30] ss:$24 sps:$4 sm:$0xff]   ;;  %v1685_v31 = vld [vmem:[#allocation5 + $0x4] ss:$24 sps:$4 sm:$0xff]  }
  0x3f   : > { %575 = vmatpush1.bf16.msra.mxu0 %v1659_v14  ;;  %618 = vmatpush1.bf16.msra.mxu1 %v1660_v16  ;;  %v1684_v32 = vld [vmem:[#allocation5 + $0x38] ss:$24 sps:$4 sm:$0xff]   ;;  %v1687_v33 = vld [vmem:[#allocation5 + $0xc] ss:$24 sps:$4 sm:$0xff]   ;;  %v1690_v36 = vld [vmem:[#allocation5 + $0x8] ss:$24 sps:$4 sm:$0xff]  }
  0x40   : > { %576 = vmatprep.subr.bf16.mxu0 %v1661_v15  ;;  %619 = vmatprep.subr.bf16.mxu1 %v1663_v17  ;;  %v1689_v34 = vld [vmem:[#allocation5] ss:$24 sps:$4 sm:$0xff]   ;;  %v1693_v35 = vld [vmem:[#allocation5 + $0x164] ss:$24 sps:$4 sm:$0xff]   ;;  %v1696_v37 = vld [vmem:[#allocation2 + $0x154] ss:$24 sps:$4 sm:$0xff]  }
  0x41   : > { %v1691_v51 = vld [vmem:[#allocation5 + $0x160] ss:$24 sps:$4 sm:$0xff]   ;;  %v1694_v52 = vld [vmem:[#allocation2 + $0x150] ss:$24 sps:$4 sm:$0xff]   ;;  %v1699_v54 = vld [vmem:[#allocation5 + $0x134] ss:$24 sps:$4 sm:$0xff]  }
  0x42   : > { %v1702_v55 = vld [vmem:[#allocation2 + $0x124] ss:$24 sps:$4 sm:$0xff]   ;;  %v1697_v56 = vld [vmem:[#allocation5 + $0x130] ss:$24 sps:$4 sm:$0xff]   ;;  %v1700_v57 = vld [vmem:[#allocation2 + $0x120] ss:$24 sps:$4 sm:$0xff]  }
  0x43   : > { %577 = vmatpush1.bf16.msra.mxu0 %v1665_v18  ;;  %620 = vmatpush1.bf16.msra.mxu1 %v1666_v20  ;;  %v1705_v58 = vld [vmem:[#allocation5 + $0x104] ss:$24 sps:$4 sm:$0xff]   ;;  %v1708_v59 = vld [vmem:[#allocation2 + $0xf4] ss:$24 sps:$4 sm:$0xff]   ;;  %v1703_v60 = vld [vmem:[#allocation5 + $0x100] ss:$24 sps:$4 sm:$0xff]  }
  0x44   : > { %578 = vmatprep.subr.bf16.mxu0 %v1667_v19  ;;  %621 = vmatprep.subr.bf16.mxu1 %v1669_v21  ;;  %v1706_v61 = vld [vmem:[#allocation2 + $0xf0] ss:$24 sps:$4 sm:$0xff]   ;;  %v1711_v62 = vld [vmem:[#allocation5 + $0xd4] ss:$24 sps:$4 sm:$0xff]   ;;  %v1714_v63 = vld [vmem:[#allocation2 + $0xc4] ss:$24 sps:$4 sm:$0xff]  }
  0x45   : > { %v1709_v1 = vld [vmem:[#allocation5 + $0xd0] ss:$24 sps:$4 sm:$0xff]   ;;  %v1712_v4 = vld [vmem:[#allocation2 + $0xc0] ss:$24 sps:$4 sm:$0xff]   ;;  %v1717_v5 = vld [vmem:[#allocation5 + $0xa4] ss:$24 sps:$4 sm:$0xff]  }
  0x46   : > { %v1720_v6 = vld [vmem:[#allocation2 + $0x94] ss:$24 sps:$4 sm:$0xff]   ;;  %v1715_v7 = vld [vmem:[#allocation5 + $0xa0] ss:$24 sps:$4 sm:$0xff]   ;;  %v1718_v8 = vld [vmem:[#allocation2 + $0x90] ss:$24 sps:$4 sm:$0xff]  }
  0x47   : > { %579 = vmatpush1.bf16.msra.mxu0 %v1671_v22  ;;  %622 = vmatpush1.bf16.msra.mxu1 %v1672_v24  ;;  %v1723_v9 = vld [vmem:[#allocation5 + $0x74] ss:$24 sps:$4 sm:$0xff]   ;;  %v1726_v10 = vld [vmem:[#allocation2 + $0x64] ss:$24 sps:$4 sm:$0xff]   ;;  %v1721_v11 = vld [vmem:[#allocation5 + $0x70] ss:$24 sps:$4 sm:$0xff]  }
  0x48   : > { %580 = vmatprep.subr.bf16.mxu0 %v1673_v23  ;;  %623 = vmatprep.subr.bf16.mxu1 %v1675_v25  ;;  %v1724_v12 = vld [vmem:[#allocation2 + $0x60] ss:$24 sps:$4 sm:$0xff]   ;;  %v1729_v13 = vld [vmem:[#allocation5 + $0x44] ss:$24 sps:$4 sm:$0xff]   ;;  %v1732_v14 = vld [vmem:[#allocation2 + $0x34] ss:$24 sps:$4 sm:$0xff]  }
  0x49   : > { %v1727_v15 = vld [vmem:[#allocation5 + $0x40] ss:$24 sps:$4 sm:$0xff]   ;;  %v1730_v16 = vld [vmem:[#allocation2 + $0x30] ss:$24 sps:$4 sm:$0xff]   ;;  %v1735_v17 = vld [vmem:[#allocation5 + $0x14] ss:$24 sps:$4 sm:$0xff]  }
  0x4a   : > { %v1738_v18 = vld [vmem:[#allocation2 + $0x4] ss:$24 sps:$4 sm:$0xff]   ;;  %v1733_v19 = vld [vmem:[#allocation5 + $0x10] ss:$24 sps:$4 sm:$0xff]   ;;  %v1736_v20 = vld [vmem:[#allocation2] ss:$24 sps:$4 sm:$0xff]  }
  0x4b   : > { %581 = vmatpush1.bf16.msra.mxu0 %v1677_v26  ;;  %624 = vmatpush1.bf16.msra.mxu1 %v1678_v28  ;;  %v1741_v21 = vld [vmem:[#allocation2 + $0x15c] ss:$24 sps:$4 sm:$0xff]   ;;  %v1739_v23 = vld [vmem:[#allocation2 + $0x158] ss:$24 sps:$4 sm:$0xff]   ;;  %v1747_v25 = vld [vmem:[#allocation2 + $0x12c] ss:$24 sps:$4 sm:$0xff]  }
  0x4c   : > { %582 = vmatprep.subr.bf16.mxu0 %v1679_v27  ;;  %625 = vmatprep.subr.bf16.mxu1 %v1681_v29  ;;  %v1744_v22 = vld [vmem:[#allocation2 + $0x164] ss:$24 sps:$4 sm:$0xff]   ;;  %v1742_v24 = vld [vmem:[#allocation2 + $0x160] ss:$24 sps:$4 sm:$0xff]   ;;  %v1750_v26 = vld [vmem:[#allocation2 + $0x134] ss:$24 sps:$4 sm:$0xff]  }
  0x4d   : > { %v1745_v27 = vld [vmem:[#allocation2 + $0x128] ss:$24 sps:$4 sm:$0xff]   ;;  %v1753_v29 = vld [vmem:[#allocation2 + $0xfc] ss:$24 sps:$4 sm:$0xff]   ;;  %vm1072_vm4 = vcmp.gt.s32.totalorder %v2076_v2, 0  ;;  %vm1073_vm5 = vcmp.gt.s32.totalorder %v2078_v3, 0 }
  0x4e   : > { %v1748_v28 = vld [vmem:[#allocation2 + $0x130] ss:$24 sps:$4 sm:$0xff]   ;;  %v1768_v38 = vld [vmem:[#allocation2 + $0xa4] ss:$24 sps:$4 sm:$0xff]   ;;  %s1362_s28 = sshll.u32 %s194_s27, 4  ;;  %s2202_s6 = scalar_lea.sflag [#allocation4], %s192_s25  ;;  %s2193_s28 = int_to_ptr.vmem [resolvable:$true] %s1362_s28 }
  0x4f   : > { %583 = vmatpush1.bf16.msra.mxu0 %v1683_v30  ;;  %626 = vmatpush1.bf16.msra.mxu1 %v1684_v32  ;;  %v1756_v30 = vld [vmem:[#allocation2 + $0x104] ss:$24 sps:$4 sm:$0xff]   ;;  %v1754_v32 = vld [vmem:[#allocation2 + $0x100] ss:$24 sps:$4 sm:$0xff]   ;;  %s1879_s7 = scalar_lea.vmem %s2193_s28, 256  ;;  %s1957_s16 = smov [#allocation7]  }
  0x50   : > { %584 = vmatprep.subr.bf16.mxu0 %v1685_v31  ;;  %627 = vmatprep.subr.bf16.mxu1 %v1687_v33  ;;  %v1751_v31 = vld [vmem:[#allocation2 + $0xf8] ss:$24 sps:$4 sm:$0xff]   ;;  %v1759_v33 = vld [vmem:[#allocation2 + $0xcc] ss:$24 sps:$4 sm:$0xff]   ;;  %p1880_p10 = scmp.ne.s32.totalorder %s2193_s28, %s1879_s7  ;;  %s1883_s8 = sshll.u32 %s1957_s16, 4  ;;  %s1884_s8 = int_to_ptr.vmem [resolvable:$false] %s1883_s8 }
  0x51   : > { %s1885_s9 = scalar_lea.vmem %s1884_s8, 512  ;;  %p1886_p11 = scmp.lt.s32.totalorder %s2193_s28, %s1884_s8 }
  0x52   : > { %p1881_p12 = pnand %p1880_p10, %p2018_p5  ;;  %p1887_p0 = scmp.lt.s32.totalorder %s1885_s9, %s1879_s7 }
  0x53   : > { %585 = vmatpush1.bf16.msra.mxu0 %v1689_v34  ;;  %628 = vmatpush1.bf16.msra.mxu1 %v1690_v36  ;;  %v1762_v34 = vld [vmem:[#allocation2 + $0xd4] ss:$24 sps:$4 sm:$0xff]   ;;  %v1760_v36 = vld [vmem:[#allocation2 + $0xd0] ss:$24 sps:$4 sm:$0xff]  }
  0x54   : > { %656 = vmatprep.subr.bf16.mxu0 %v1693_v35  ;;  %939 = vmatprep.subr.bf16.mxu1 %v1696_v37  ;;  %v1757_v35 = vld [vmem:[#allocation2 + $0xc8] ss:$24 sps:$4 sm:$0xff]   ;;  %v1765_v37 = vld [vmem:[#allocation2 + $0x9c] ss:$24 sps:$4 sm:$0xff]   ;;  %p1882_p8 = pneg %p1881_p12  ;;  %p1888_p1 = por %p1887_p0, %p1886_p11 }
  0x56   : > { %p1889_p3 = pnand %p1888_p1, %p1882_p8 }
  0xb5   : > { %v221_v40 = vpop.permute.xlu1 %220  ;;  %v209_v41 = vpop.permute.xlu0 %208 }
  0xb6   : > { %vm225_vm0 = vcmp.eq.s32.totalorder %v204_v39, %v221_v40  ;;  %vm213_vm1 = vcmp.eq.s32.totalorder %v204_v39, %v209_v41  ;;  %v1766_v40 = vld [vmem:[#allocation2 + $0xa0] ss:$24 sps:$4 sm:$0xff]   ;;  %v1771_v41 = vld [vmem:[#allocation2 + $0x6c] ss:$24 sps:$4 sm:$0xff]  }
  0xb7   : > { %v1459_v43 = vsel %vm225_vm0, 1.0, %v1955_v42  ;;  %v1457_v44 = vsel %vm213_vm1, 1.0, %v1955_v42 }
  0xb8   : > { %v231_v49 = vsub.f32 %v1457_v44, %v1459_v43  ;;  %v1769_v43 = vld [vmem:[#allocation2 + $0x68] ss:$24 sps:$4 sm:$0xff]  }
  0xb9   : > { %v224_v45 = vpop.permute.xlu1 %223  ;;  %v212_v46 = vpop.permute.xlu0 %211  ;;  %v1772_v44 = vld [vmem:[#allocation2 + $0x70] ss:$24 sps:$4 sm:$0xff]  }
  0xba   : > { %vm226_vm2 = vcmp.eq.s32.totalorder %v204_v39, %v224_v45  ;;  %vm214_vm3 = vcmp.eq.s32.totalorder %v204_v39, %v212_v46  ;;  %v1763_v39 = vld [vmem:[#allocation2 + $0x98] ss:$24 sps:$4 sm:$0xff]   ;;  %v1777_v45 = vld [vmem:[#allocation2 + $0x3c] ss:$24 sps:$4 sm:$0xff]  }
  0xbb   : > { %v1460_v47 = vsel %vm226_vm2, 1.0, %v1955_v42  ;;  %v1458_v48 = vsel %vm214_vm3, 1.0, %v1955_v42  ;;  %v1774_v42 = vld [vmem:[#allocation2 + $0x74] ss:$24 sps:$4 sm:$0xff]   ;;  %v1780_v46 = vld [vmem:[#allocation2 + $0x44] ss:$24 sps:$4 sm:$0xff]  }
  0xbc   : > { %v232_v50 = vsub.f32 %v1458_v48, %v1460_v47  ;;  %v1775_v47 = vld [vmem:[#allocation2 + $0x38] ss:$24 sps:$4 sm:$0xff]  }
  0xbd   : > { %v1778_v48 = vld [vmem:[#allocation2 + $0x40] ss:$24 sps:$4 sm:$0xff]  }
  0xbe   : > { %v2084_v53 = vpack.c.bf16 %v232_v50, %v231_v49  ;;  %v1783_v49 = vld [vmem:[#allocation2 + $0xc] ss:$24 sps:$4 sm:$0xff]  }
  0xbf   : > { %v1786_v50 = vld [vmem:[#allocation2 + $0x14] ss:$24 sps:$4 sm:$0xff]  }
  0xc0   : > { %603 = vmatmul.mubr.bf16.vlgmr.msra.gmra.mxu0 %v2084_v53  ;;  %646 = vmatmul.mubr.bf16.vlgmr.msra.gmra.mxu1 %v2084_v53 }
  0xc1   : > { %657 = vmatpush1.bf16.msra.mxu0 %v1691_v51  ;;  %940 = vmatpush1.bf16.msra.mxu1 %v1694_v52  ;;  %v1781_v51 = vld [vmem:[#allocation2 + $0x8] ss:$24 sps:$4 sm:$0xff]  }
  0xc2   : > { %658 = vmatprep.subr.bf16.mxu0 %v1699_v54  ;;  %941 = vmatprep.subr.bf16.mxu1 %v1702_v55  ;;  %v1784_v52 = vld [vmem:[#allocation2 + $0x10] ss:$24 sps:$4 sm:$0xff]   ;;  %v1956_v54 = vmov 2   ;;  %v1334_v55 = vsel %vm1072_vm4, 1, %v1953_v0 }
  0xc3   : > { %688 = vmatprep.mubr.bf16.mxu0 %v1953_v0  ;;  %971 = vmatprep.mubr.bf16.mxu1 %v1953_v0 }
  0xc4   : > { %1641 = vset.pattern.permute.xlu0 %v1956_v54  ;;  %1642 = vset.pattern.permute.xlu1 %v1956_v54 }
  0xc5   : > { %659 = vmatpush1.bf16.msra.mxu0 %v1697_v56  ;;  %942 = vmatpush1.bf16.msra.mxu1 %v1700_v57  ;;  %v1335_v56 = vsel %vm1073_vm5, 1, %v1953_v0 }
  0xc6   : > { %660 = vmatprep.subr.bf16.mxu0 %v1705_v58  ;;  %943 = vmatprep.subr.bf16.mxu1 %v1708_v59 }
  0xc7   : > { %1337 = vperm.xlu0 %1641, %v1334_v55   ;;  %1340 = vperm.xlu1 %1642, %v1335_v56  }
  0xc9   : > { %661 = vmatpush1.bf16.msra.mxu0 %v1703_v60  ;;  %944 = vmatpush1.bf16.msra.mxu1 %v1706_v61 }
  0xca   : > { %662 = vmatprep.subr.bf16.mxu0 %v1711_v62  ;;  %945 = vmatprep.subr.bf16.mxu1 %v1714_v63 }
  0xcd   : > { %663 = vmatpush1.bf16.msra.mxu0 %v1709_v1  ;;  %946 = vmatpush1.bf16.msra.mxu1 %v1712_v4 }
  0xce   : > { %664 = vmatprep.subr.bf16.mxu0 %v1717_v5  ;;  %947 = vmatprep.subr.bf16.mxu1 %v1720_v6 }
  0xd1   : > { %665 = vmatpush1.bf16.msra.mxu0 %v1715_v7  ;;  %948 = vmatpush1.bf16.msra.mxu1 %v1718_v8 }
  0xd2   : > { %666 = vmatprep.subr.bf16.mxu0 %v1723_v9  ;;  %949 = vmatprep.subr.bf16.mxu1 %v1726_v10 }
  0xd5   : > { %667 = vmatpush1.bf16.msra.mxu0 %v1721_v11  ;;  %950 = vmatpush1.bf16.msra.mxu1 %v1724_v12 }
  0xd6   : > { %668 = vmatprep.subr.bf16.mxu0 %v1729_v13  ;;  %951 = vmatprep.subr.bf16.mxu1 %v1732_v14 }
  0xd9   : > { %669 = vmatpush1.bf16.msra.mxu0 %v1727_v15  ;;  %952 = vmatpush1.bf16.msra.mxu1 %v1730_v16 }
  0xda   : > { %670 = vmatprep.subr.bf16.mxu0 %v1735_v17  ;;  %953 = vmatprep.subr.bf16.mxu1 %v1738_v18 }
  0xdd   : > { %671 = vmatpush1.bf16.msra.mxu0 %v1733_v19  ;;  %954 = vmatpush1.bf16.msra.mxu1 %v1736_v20 }
  0xde   : > { %982 = vmatprep.subr.bf16.mxu0 %v1741_v21  ;;  %1025 = vmatprep.subr.bf16.mxu1 %v1744_v22 }
  0xe0   : > { %689 = vmatmul.mubr.bf16.vlgmr.msra.gmra.mxu0 %v2084_v53  ;;  %972 = vmatmul.mubr.bf16.vlgmr.msra.gmra.mxu1 %v2084_v53 }
  0xe1   : > { %983 = vmatpush1.bf16.msra.mxu0 %v1739_v23  ;;  %1026 = vmatpush1.bf16.msra.mxu1 %v1742_v24 }
  0xe2   : > { %984 = vmatprep.subr.bf16.mxu0 %v1747_v25  ;;  %1027 = vmatprep.subr.bf16.mxu1 %v1750_v26 }
  0xe3   : > { %1014 = vmatprep.mubr.bf16.mxu0 %v1953_v0  ;;  %1057 = vmatprep.mubr.bf16.mxu1 %v1953_v0 }
  0xe5   : > { %985 = vmatpush1.bf16.msra.mxu0 %v1745_v27  ;;  %1028 = vmatpush1.bf16.msra.mxu1 %v1748_v28 }
  0xe6   : > { %986 = vmatprep.subr.bf16.mxu0 %v1753_v29  ;;  %1029 = vmatprep.subr.bf16.mxu1 %v1756_v30 }
  0xe9   : > { %987 = vmatpush1.bf16.msra.mxu0 %v1751_v31  ;;  %1030 = vmatpush1.bf16.msra.mxu1 %v1754_v32 }
  0xea   : > { %988 = vmatprep.subr.bf16.mxu0 %v1759_v33  ;;  %1031 = vmatprep.subr.bf16.mxu1 %v1762_v34 }
  0xed   : > { %989 = vmatpush1.bf16.msra.mxu0 %v1757_v35  ;;  %1032 = vmatpush1.bf16.msra.mxu1 %v1760_v36 }
  0xee   : > { %990 = vmatprep.subr.bf16.mxu0 %v1765_v37  ;;  %1033 = vmatprep.subr.bf16.mxu1 %v1768_v38 }
  0xf1   : > { %991 = vmatpush1.bf16.msra.mxu0 %v1763_v39  ;;  %1034 = vmatpush1.bf16.msra.mxu1 %v1766_v40 }
  0xf2   : > { %992 = vmatprep.subr.bf16.mxu0 %v1771_v41  ;;  %1035 = vmatprep.subr.bf16.mxu1 %v1774_v42 }
  0xf5   : > { %993 = vmatpush1.bf16.msra.mxu0 %v1769_v43  ;;  %1036 = vmatpush1.bf16.msra.mxu1 %v1772_v44 }
  0xf6   : > { %994 = vmatprep.subr.bf16.mxu0 %v1777_v45  ;;  %1037 = vmatprep.subr.bf16.mxu1 %v1780_v46 }
  0xf9   : > { %995 = vmatpush1.bf16.msra.mxu0 %v1775_v47  ;;  %1038 = vmatpush1.bf16.msra.mxu1 %v1778_v48 }
  0xfa   : > { %996 = vmatprep.subr.bf16.mxu0 %v1783_v49  ;;  %1039 = vmatprep.subr.bf16.mxu1 %v1786_v50 }
  0xfd   : > { %997 = vmatpush1.bf16.msra.mxu0 %v1781_v51  ;;  %1040 = vmatpush1.bf16.msra.mxu1 %v1784_v52 }
 0x100   : > { %1015 = vmatmul.mubr.bf16.vlgmr.msra.gmra.mxu0 %v2084_v53  ;;  %1058 = vmatmul.mubr.bf16.vlgmr.msra.gmra.mxu1 %v2084_v53 }
 0x180   : > { %v604_v57 = vpop.f32.mrf.mxu0  ;;  %v647_v58 = vpop.f32.mrf.mxu1 }
 0x182   : > { %v606_v59 = vpop.f32.mrf.mxu0  ;;  %v649_v60 = vpop.f32.mrf.mxu1 }
 0x184   : > { %v608_v61 = vpop.f32.mrf.mxu0  ;;  %v651_v62 = vpop.f32.mrf.mxu1 }
 0x186   : > { %v610_v53 = vpop.f32.mrf.mxu0  ;;  %v653_v63 = vpop.f32.mrf.mxu1 }
 0x1a0   : > { %v690_v2 = vpop.f32.mrf.mxu0  ;;  %v973_v1 = vpop.f32.mrf.mxu1 }
 0x1a1   : > { %v974_v13 = vadd.f32 %v973_v1, %v604_v57 }
 0x1a2   : > { %v692_v3 = vpop.f32.mrf.mxu0  ;;  %v975_v4 = vpop.f32.mrf.mxu1 }
 0x1a3   : > { %v976_v10 = vadd.f32 %v975_v4, %v606_v59  ;;  %v1074_v25 = vmul.f32 %v974_v13, %v974_v13 }
 0x1a4   : > { %v694_v5 = vpop.f32.mrf.mxu0  ;;  %v977_v6 = vpop.f32.mrf.mxu1 }
 0x1a5   : > { %v1076_v21 = vmul.f32 %v976_v10, %v976_v10  ;;  %v978_v26 = vadd.f32 %v977_v6, %v608_v61 }
 0x1a6   : > { %v696_v7 = vpop.f32.mrf.mxu0  ;;  %v979_v8 = vpop.f32.mrf.mxu1 }
 0x1a7   : > { %v980_v22 = vadd.f32 %v979_v8, %v610_v53  ;;  %v2100_v35 = vadd.f32 %v1076_v21, %v1074_v25  ;;  %v1075_v39 = vmul.f32 %v978_v26, %v978_v26 }
 0x1a9   : > { %v1077_v36 = vmul.f32 %v980_v22, %v980_v22  ;;  %vm1082_vm6 = vcmp.eq.f32.partialorder %v2100_v35, inf  ;;  %vm1084_vm7 = vcmp.eq.f32.partialorder %v2100_v35, 0.0 }
 0x1ab   : > { %v2103_v43 = vadd.f32 %v1077_v36, %v1075_v39 }
 0x1ad   : > { %vm1089_vm8 = vcmp.eq.f32.partialorder %v2103_v43, inf  ;;  %vm1091_vm10 = vcmp.eq.f32.partialorder %v2103_v43, 0.0 }
 0x1c0   : > { %v1016_v9 = vpop.f32.mrf.mxu0  ;;  %v1059_v0 = vpop.f32.mrf.mxu1 }
 0x1c1   : > { %v1017_v11 = vadd.f32 %v1016_v9, %v647_v58  ;;  %v1060_v12 = vadd.f32 %v1059_v0, %v690_v2 }
 0x1c2   : > { %v1018_v14 = vpop.f32.mrf.mxu0  ;;  %v1061_v15 = vpop.f32.mrf.mxu1 }
 0x1c3   : > { %v1068_v16 = vadd.f32 %v1060_v12, %v1017_v11  ;;  %v1019_v17 = vadd.f32 %v1018_v14, %v649_v60  ;;  %v1062_v18 = vadd.f32 %v1061_v15, %v692_v3 }
 0x1c4   : > { %v1020_v19 = vpop.f32.mrf.mxu0  ;;  %v1063_v20 = vpop.f32.mrf.mxu1 }
 0x1c5   : > { %v1070_v23 = vadd.f32 %v1062_v18, %v1019_v17  ;;  %v1021_v24 = vadd.f32 %v1020_v19, %v651_v62  ;;  %v1064_v27 = vadd.f32 %v1063_v20, %v694_v5  ;;  %v1094_v30 = vmul.f32 %v1068_v16, %v1068_v16 }
 0x1c6   : > { %v1022_v28 = vpop.f32.mrf.mxu0  ;;  %v1065_v29 = vpop.f32.mrf.mxu1  ;;  %v1100_v49 = vmul.f32 %v1068_v16, %v974_v13  ;;  %v1085_v20 = vand.u32 2147483648, %v2100_v35 }
 0x1c7   : > { %v1096_v31 = vmul.f32 %v1070_v23, %v1070_v23  ;;  %v1023_v32 = vadd.f32 %v1022_v28, %v653_v63  ;;  %v1066_v33 = vadd.f32 %v1065_v29, %v696_v7  ;;  %v1069_v34 = vadd.f32 %v1064_v27, %v1021_v24 }
 0x1c8   : > { %v1102_v48 = vmul.f32 %v1070_v23, %v976_v10 }
 0x1c9   : > { %v1098_v37 = vadd.f32 %v1096_v31, %v1094_v30  ;;  %v1071_v38 = vadd.f32 %v1066_v33, %v1023_v32  ;;  %v1095_v41 = vmul.f32 %v1069_v34, %v1069_v34  ;;  %v1101_v52 = vmul.f32 %v1069_v34, %v978_v26 }
 0x1ca   : > { %v1104_v50 = vadd.f32 %v1102_v48, %v1100_v49 }
 0x1cb   : > { %v1108_v40 = vmul.f32 %v1098_v37, %v2100_v35  ;;  %v1097_v42 = vmul.f32 %v1071_v38, %v1071_v38  ;;  %v1103_v51 = vmul.f32 %v1071_v38, %v980_v22  ;;  %v1092_v38 = vand.u32 2147483648, %v2103_v43 }
 0x1cc   : > { %v1106_v54 = vsub.f32 0.0, %v1104_v50 }
 0x1cd   : > { %v1110_v44 = vmax.f32 %v1108_v40, 1e-12  ;;  %v1099_v45 = vadd.f32 %v1097_v42, %v1095_v41  ;;  %v1105_v55 = vadd.f32 %v1103_v51, %v1101_v52 }
 0x1cf   : > { %1787 = vrsqrt.f32 %v1110_v44  ;;  %v1109_v46 = vmul.f32 %v1099_v45, %v2103_v43  ;;  %v1107_v59 = vsub.f32 0.0, %v1105_v55 }
 0x1d1   : > { %v1111_v47 = vmax.f32 %v1109_v46, 1e-12 }
 0x1d3   : > { %1789 = vrsqrt.f32 %v1111_v47  ;;  %v1172_v47 = vmul.f32 -0.8888889, %v2100_v35 }
 0x1d4   : > { %1791 = vrsqrt.f32 %v2100_v35 }
 0x1d5   : > { %1793 = vrsqrt.f32 %v2103_v43 }
 0x1dc   : > { %v1788_v56 = vpop.eup %1787 }
 0x1dd   : > { %v2107_v57 = vmul.f32 %v1788_v56, %v1106_v54 }
 0x1df   : > { %v1116_v58 = vand.u32 2147483647, %v2107_v57  ;;  %vm1166_vm13 = vcmp.lt.f32.partialorder %v2107_v57, 0.0  ;;  %v1173_v57 = vmul.f32 -0.8888889, %v2103_v43 }
 0x1e0   : > { %v1790_v60 = vpop.eup %1789 }
 0x1e1   : > { %v1118_v61 = vmul.f32 -0.072335415, %v1116_v58  ;;  %v1146_v62 = vsub.f32 1.0, %v1116_v58  ;;  %v2110_v53 = vmul.f32 %v1790_v60, %v1107_v59  ;;  %v1792_v7 = vpop.eup %1791  ;;  %v1174_v59 = vmul.f32 1.442695, %v1172_v47 }
 0x1e2   : > { %v1081_v12 = vmul.f32 %v1792_v7, %v2100_v35  ;;  %v1794_v18 = vpop.eup %1793 }
 0x1e3   : > { %v1120_v63 = vadd.f32 0.38216802, %v1118_v61  ;;  %v1148_v2 = vmax.f32 %v1146_v62, 0.0  ;;  %v1117_v1 = vand.u32 2147483647, %v2110_v53  ;;  %v1088_v26 = vmul.f32 %v1794_v18, %v2103_v43 }
 0x1e4   : > { %v1083_v17 = vsel %vm1082_vm6, %v2100_v35, %v1081_v12  ;;  %vm1167_vm15 = vcmp.lt.f32.partialorder %v2110_v53, 0.0 }
 0x1e5   : > { %v1122_v3 = vmul.f32 %v1120_v63, %v1116_v58  ;;  %1795 = vrsqrt.f32 %v1148_v2  ;;  %v1119_v4 = vmul.f32 -0.072335415, %v1117_v1  ;;  %v1147_v5 = vsub.f32 1.0, %v1117_v1 }
 0x1e6   : > { %v2122_v24 = vsel %vm1084_vm7, %v1085_v20, %v1083_v17  ;;  %v1090_v36 = vsel %vm1089_vm8, %v2103_v43, %v1088_v26  ;;  %vm1152_vm9 = vcmp.eq.f32.partialorder %v1148_v2, inf  ;;  %v1155_v42 = vand.u32 2147483648, %v1148_v2 }
 0x1e7   : > { %v1124_v6 = vadd.f32 -0.97907746, %v1122_v3  ;;  %v1121_v8 = vadd.f32 0.38216802, %v1119_v4  ;;  %v2114_v9 = vmax.f32 %v1147_v5, 0.0  ;;  %v1557_v30 = vadd.f32 -2.0, %v2122_v24 }
 0x1e8   : > { %v1559_v34 = vadd.f32 -4.0, %v2122_v24  ;;  %v2132_v46 = vsel %vm1091_vm10, %v1092_v38, %v1090_v36  ;;  %vm1154_vm11 = vcmp.eq.f32.partialorder %v1148_v2, 0.0  ;;  %v1262_v38 = vmul.f32 0.2, %v2122_v24 }
 0x1e9   : > { %v1126_v0 = vmul.f32 %v1124_v6, %v1116_v58  ;;  %v1123_v10 = vmul.f32 %v1121_v8, %v1117_v1  ;;  %1797 = vrsqrt.f32 %v2114_v9  ;;  %v1180_v41 = vmul.f32 %v1557_v30, %v1557_v30 }
 0x1ea   : > { %v1190_v49 = vmul.f32 %v1559_v34, %v1559_v34  ;;  %vm1159_vm12 = vcmp.eq.f32.partialorder %v2114_v9, inf  ;;  %v1558_v55 = vadd.f32 -2.0, %v2132_v46  ;;  %v1162_v61 = vand.u32 2147483648, %v2114_v9 }
 0x1eb   : > { %v1128_v11 = vadd.f32 1.7699744, %v1126_v0  ;;  %v1125_v13 = vadd.f32 -0.97907746, %v1123_v10  ;;  %v1182_v54 = vmul.f32 -0.8888889, %v1180_v41  ;;  %1799 = vpow2.f32 %v1174_v59 }
 0x1ec   : > { %v1192_v62 = vmul.f32 -0.8888889, %v1190_v49  ;;  %vm1161_vm14 = vcmp.eq.f32.partialorder %v2114_v9, 0.0  ;;  %v1560_v63 = vadd.f32 -4.0, %v2132_v46  ;;  %v1181_v5 = vmul.f32 %v1558_v55, %v1558_v55 }
 0x1ed   : > { %v1130_v14 = vmul.f32 %v1128_v11, %v1116_v58  ;;  %v1127_v15 = vmul.f32 %v1125_v13, %v1117_v1  ;;  %v1184_v4 = vmul.f32 1.442695, %v1182_v54  ;;  %v1266_v41 = vmul.f32 0.1, %v2122_v24 }
 0x1ee   : > { %v1194_v0 = vmul.f32 1.442695, %v1192_v62  ;;  %v1183_v13 = vmul.f32 -0.8888889, %v1181_v5  ;;  %v1267_v5 = vmul.f32 0.1, %v2132_v46 }
 0x1ef   : > { %v1132_v16 = vadd.f32 -2.874776, %v1130_v14  ;;  %v1129_v19 = vadd.f32 1.7699744, %v1127_v15  ;;  %1801 = vpow2.f32 %v1184_v4  ;;  %v1191_v14 = vmul.f32 %v1560_v63, %v1560_v63 }
 0x1f0   : > { %1803 = vpow2.f32 %v1194_v0  ;;  %v1268_v62 = vsub.f32 0.7, %v1266_v41  ;;  %v1263_v4 = vmul.f32 0.2, %v2132_v46 }
 0x1f1   : > { %v1134_v21 = vmul.f32 %v1132_v16, %v1116_v58  ;;  %v1131_v23 = vmul.f32 %v1129_v19, %v1117_v1 }
 0x1f2   : > { %v1796_v22 = vpop.eup %1795 }
 0x1f3   : > { %v1136_v25 = vadd.f32 5.09812, %v1134_v21  ;;  %v1133_v27 = vadd.f32 -2.874776, %v1131_v23  ;;  %v1151_v29 = vmul.f32 %v1796_v22, %v1148_v2  ;;  %v1176_v21 = vmul.f32 1.442695, %v1173_v57 }
 0x1f5   : > { %v1138_v28 = vmul.f32 %v1136_v25, %v1116_v58  ;;  %v1135_v31 = vmul.f32 %v1133_v27, %v1117_v1  ;;  %v1153_v40 = vsel %vm1152_vm9, %v1148_v2, %v1151_v29  ;;  %v1186_v27 = vmul.f32 1.442695, %v1183_v13 }
 0x1f6   : > { %v1798_v32 = vpop.eup %1797  ;;  %v1156_v50 = vsel %vm1154_vm11, %v1155_v42, %v1153_v40  ;;  %v1274_v42 = vmul.f32 -0.05, %v2122_v24 }
 0x1f7   : > { %v1140_v33 = vadd.f32 -12.295606, %v1138_v28  ;;  %v1137_v37 = vadd.f32 5.09812, %v1135_v31  ;;  %v1158_v45 = vmul.f32 %v1798_v32, %v2114_v9  ;;  %v1193_v28 = vmul.f32 -0.8888889, %v1191_v14 }
 0x1f8   : > { %v1800_v36 = vpop.eup %1799 }
 0x1f9   : > { %v1142_v39 = vmul.f32 %v1140_v33, %v1116_v58  ;;  %v1139_v44 = vmul.f32 %v1137_v37, %v1117_v1  ;;  %v1160_v58 = vsel %vm1159_vm12, %v2114_v9, %v1158_v45  ;;  %v1196_v34 = vmul.f32 1.442695, %v1193_v28 }
 0x1fa   : > { %v1163_v3 = vsel %vm1161_vm14, %v1162_v61, %v1160_v58 }
 0x1fb   : > { %v1144_v48 = vadd.f32 90.0, %v1142_v39  ;;  %v1141_v51 = vadd.f32 -12.295606, %v1139_v44  ;;  %v2160_v44 = vmul.f32 0.01, %v2122_v24 }
 0x1fc   : > { %v1802_v37 = vpop.eup %1801 }
 0x1fd   : > { %v1164_v52 = vmul.f32 %v1156_v50, %v1144_v48  ;;  %v1143_v56 = vmul.f32 %v1141_v51, %v1117_v1  ;;  %v1804_v39 = vpop.eup %1803  ;;  %v1264_v48 = vsub.f32 1.0, %v1262_v38  ;;  %v1269_v38 = vsub.f32 0.7, %v1267_v5 }
 0x1ff   : > { %v1168_v60 = vsub.f32 180.0, %v1164_v52  ;;  %v1145_v35 = vadd.f32 90.0, %v1143_v56 }
 0x201   : > { %v2142_v2 = vsel %vm1166_vm13, %v1168_v60, %v1164_v52  ;;  %v1165_v8 = vmul.f32 %v1163_v3, %v1145_v35 }
 0x202   : > { %v1198_v1 = vmul.f32 %v2142_v2, %v2142_v2  ;;  %v1561_v6 = vadd.f32 -90.0, %v2142_v2  ;;  %v1563_v7 = vadd.f32 -180.0, %v2142_v2  ;;  %v1270_v49 = vmul.f32 0.002, %v2142_v2 }
 0x203   : > { %v1169_v12 = vsub.f32 180.0, %v1165_v8  ;;  %v1276_v50 = vmul.f32 0.001, %v2142_v2 }
 0x204   : > { %v1200_v9 = vmul.f32 -0.00055555557, %v1198_v1  ;;  %v1208_v10 = vmul.f32 %v1561_v6, %v1561_v6  ;;  %v1218_v11 = vmul.f32 %v1563_v7, %v1563_v7 }
 0x205   : > { %v2150_v18 = vsel %vm1167_vm15, %v1169_v12, %v1165_v8  ;;  %v1272_v8 = vsub.f32 %v1268_v62, %v1270_v49  ;;  %v1278_v57 = vsub.f32 %v1274_v42, %v1276_v50 }
 0x206   : > { %v1202_v15 = vmul.f32 1.442695, %v1200_v9  ;;  %v1210_v16 = vmul.f32 -0.00055555557, %v1208_v10  ;;  %v1220_v17 = vmul.f32 -0.00055555557, %v1218_v11  ;;  %v1199_v19 = vmul.f32 %v2150_v18, %v2150_v18 }
 0x207   : > { %v1562_v43 = vadd.f32 -90.0, %v2150_v18  ;;  %v1564_v20 = vadd.f32 -180.0, %v2150_v18  ;;  %v1271_v11 = vmul.f32 0.002, %v2150_v18  ;;  %v1277_v12 = vmul.f32 0.001, %v2150_v18 }
 0x208   : > { %1805 = vpow2.f32 %v1202_v15  ;;  %v1212_v22 = vmul.f32 1.442695, %v1210_v16  ;;  %v1222_v53 = vmul.f32 1.442695, %v1220_v17  ;;  %v1201_v23 = vmul.f32 -0.00055555557, %v1199_v19 }
 0x209   : > { %v1209_v25 = vmul.f32 %v1562_v43, %v1562_v43  ;;  %v1219_v26 = vmul.f32 %v1564_v20, %v1564_v20  ;;  %v1273_v49 = vsub.f32 %v1269_v38, %v1271_v11 }
 0x20a   : > { %1807 = vpow2.f32 %v1212_v22  ;;  %v1204_v29 = vmul.f32 1.442695, %v1201_v23 }
 0x20b   : > { %1809 = vpow2.f32 %v1222_v53  ;;  %v1211_v30 = vmul.f32 -0.00055555557, %v1209_v25  ;;  %v1221_v31 = vmul.f32 -0.00055555557, %v1219_v26 }
 0x20c   : > { %1811 = vpow2.f32 %v1176_v21 }
 0x20d   : > { %v1214_v32 = vmul.f32 1.442695, %v1211_v30  ;;  %v1224_v33 = vmul.f32 1.442695, %v1221_v31  ;;  %1813 = vpow2.f32 %v1186_v27 }
 0x20e   : > { %1815 = vpow2.f32 %v1204_v29 }
 0x20f   : > { %1817 = vpow2.f32 %v1214_v32 }
 0x210   : > { %1819 = vpow2.f32 %v1224_v33 }
 0x211   : > { %1821 = vpow2.f32 %v1196_v34 }
 0x215   : > { %v1806_v40 = vpop.eup %1805 }
 0x216   : > { %v1226_v47 = vmin.f32 %v1800_v36, %v1806_v40  ;;  %v2164_v55 = vmin.f32 %v1804_v39, %v1806_v40  ;;  %v1232_v60 = vmin.f32 %v1802_v37, %v1806_v40 }
 0x217   : > { %v1808_v45 = vpop.eup %1807 }
 0x218   : > { %v1810_v51 = vpop.eup %1809  ;;  %v1228_v52 = vmin.f32 %v1800_v36, %v1808_v45  ;;  %v1234_v54 = vmin.f32 %v1802_v37, %v1808_v45  ;;  %v2166_v56 = vmin.f32 %v1804_v39, %v1808_v45  ;;  %v1296_v10 = vmul.f32 %v1264_v48, %v1226_v47 }
 0x219   : > { %v1812_v58 = vpop.eup %1811  ;;  %v1230_v59 = vmin.f32 %v1800_v36, %v1810_v51  ;;  %v1236_v61 = vmin.f32 %v1802_v37, %v1810_v51  ;;  %v1242_v9 = vmin.f32 %v1804_v39, %v1810_v51  ;;  %v1310_v27 = vmul.f32 0.4, %v1232_v60 }
 0x21a   : > { %v1814_v35 = vpop.eup %1813  ;;  %v1244_v63 = vadd.f32 %v1228_v52, %v1226_v47  ;;  %v1252_v3 = vadd.f32 %v2166_v56, %v2164_v55  ;;  %v1298_v16 = vmul.f32 %v1272_v8, %v1228_v52  ;;  %v1265_v37 = vsub.f32 1.0, %v1263_v4 }
 0x21b   : > { %v1816_v1 = vpop.eup %1815  ;;  %v1246_v6 = vadd.f32 %v1232_v60, %v1230_v59  ;;  %v1250_v7 = vadd.f32 %v1236_v61, %v1234_v54  ;;  %v1308_v23 = vmul.f32 0.275, %v1230_v59  ;;  %v1275_v39 = vmul.f32 -0.05, %v2132_v46 }
 0x21c   : > { %v1818_v0 = vpop.eup %1817  ;;  %v1227_v19 = vmin.f32 %v1812_v58, %v1816_v1  ;;  %v1233_v25 = vmin.f32 %v1814_v35, %v1816_v1  ;;  %v1300_v41 = vadd.f32 %v1298_v16, %v1296_v10  ;;  %v1284_v47 = vmul.f32 0.0002, %v2142_v2 }
 0x21d   : > { %v1820_v13 = vpop.eup %1819  ;;  %v1248_v14 = vadd.f32 %v1246_v6, %v1244_v63  ;;  %v1254_v15 = vadd.f32 %v1252_v3, %v1250_v7  ;;  %v1302_v17 = vadd.f32 %v1246_v6, %v1234_v54  ;;  %v1229_v43 = vmin.f32 %v1812_v58, %v1818_v0 }
 0x21e   : > { %v1231_v20 = vmin.f32 %v1812_v58, %v1820_v13  ;;  %v1235_v21 = vmin.f32 %v1814_v35, %v1818_v0  ;;  %v1822_v22 = vpop.eup %1821  ;;  %v1237_v26 = vmin.f32 %v1814_v35, %v1820_v13  ;;  %v1312_v42 = vadd.f32 %v1310_v27, %v1308_v23 }
 0x21f   : > { %v1256_v53 = vadd.f32 %v1254_v15, %v1248_v14  ;;  %v2174_v28 = vmin.f32 %v1822_v22, %v1816_v1  ;;  %v1241_v29 = vmin.f32 %v1822_v22, %v1818_v0  ;;  %v1245_v30 = vadd.f32 %v1229_v43, %v1227_v19 }
 0x220   : > { %v1304_v32 = vmul.f32 %v1302_v17, %v1278_v57  ;;  %v1247_v33 = vadd.f32 %v1233_v25, %v1231_v20  ;;  %v1251_v34 = vadd.f32 %v1237_v26, %v1235_v21  ;;  %v1314_v52 = vmul.f32 0.25, %v1234_v54 }
 0x221   : > { %v1258_v31 = vadd.f32 %v1256_v53, %v1242_v9  ;;  %v1253_v36 = vadd.f32 %v1241_v29, %v2174_v28  ;;  %v1279_v58 = vsub.f32 %v1275_v39, %v1277_v12  ;;  %v1243_v59 = vmin.f32 %v1822_v22, %v1820_v13 }
 0x222   : > { %v1249_v45 = vadd.f32 %v1247_v33, %v1245_v30  ;;  %v1303_v50 = vadd.f32 %v1247_v33, %v1235_v21  ;;  %v1306_v51 = vadd.f32 %v1304_v32, %v1300_v41  ;;  %v1299_v62 = vmul.f32 %v1273_v49, %v1229_v43 }
 0x223   : > { %v1260_v40 = vmax.f32 %v1258_v31, 1e-30  ;;  %v1255_v48 = vadd.f32 %v1253_v36, %v1251_v34  ;;  %v1309_v35 = vmul.f32 0.275, %v1231_v20  ;;  %v1282_v63 = vsub.f32 0.07, %v2160_v44  ;;  %v1338_v20 = vpop.permute.xlu0 %1337 }
 0x224   : > { %v1288_v3 = vmul.f32 0.055, %v2122_v24  ;;  %v1316_v4 = vadd.f32 %v1314_v52, %v1312_v42  ;;  %v1320_v5 = vadd.f32 %v2166_v56, %v1236_v61  ;;  %v1297_v6 = vmul.f32 %v1265_v37, %v1227_v19 }
 0x225   : > { %1823 = vrcp.f32 %v1260_v40  ;;  %v1257_v60 = vadd.f32 %v1255_v48, %v1249_v45  ;;  %v1305_v7 = vmul.f32 %v1303_v50, %v1279_v58  ;;  %v1311_v8 = vmul.f32 0.4, %v1233_v25 }
 0x226   : > { %v1286_v57 = vsub.f32 %v1282_v63, %v1284_v47  ;;  %v1292_v54 = vmul.f32 0.0008, %v2142_v2  ;;  %v1318_v0 = vadd.f32 %v1316_v4, %v1306_v51  ;;  %v1281_v10 = vmul.f32 0.01, %v2132_v46 }
 0x227   : > { %v1259_v1 = vadd.f32 %v1257_v60, %v1243_v59  ;;  %v1301_v11 = vadd.f32 %v1299_v62, %v1297_v6  ;;  %v1313_v12 = vadd.f32 %v1311_v8, %v1309_v35  ;;  %v1290_v44 = vsub.f32 0.2225, %v1288_v3 }
 0x228   : > { %v1322_v24 = vmul.f32 %v1320_v5, %v1286_v57  ;;  %v1285_v13 = vmul.f32 0.0002, %v2150_v18  ;;  %v1315_v61 = vmul.f32 0.25, %v1235_v21  ;;  %v1283_v16 = vsub.f32 0.07, %v1281_v10 }
 0x229   : > { %v1261_v9 = vmax.f32 %v1259_v1, 1e-30  ;;  %v1307_v56 = vadd.f32 %v1305_v7, %v1301_v11  ;;  %v1294_v14 = vadd.f32 %v1292_v54, %v1290_v44  ;;  %v1289_v2 = vmul.f32 0.055, %v2132_v46 }
 0x22a   : > { %v1324_v15 = vadd.f32 %v1322_v24, %v1318_v0  ;;  %v1317_v17 = vadd.f32 %v1315_v61, %v1313_v12  ;;  %v1321_v19 = vadd.f32 %v1241_v29, %v1237_v26  ;;  %v1287_v22 = vsub.f32 %v1283_v16, %v1285_v13 }
 0x22b   : > { %1825 = vrcp.f32 %v1261_v9  ;;  %v1326_v43 = vmul.f32 %v1294_v14, %v2164_v55  ;;  %v1293_v53 = vmul.f32 0.0008, %v2150_v18  ;;  %vm1342_vm0 = vcmp.eq.s32.totalorder %v1338_v20, 1  ;;  %v1341_v55 = vpop.permute.xlu1 %1340 }
 0x22c   : > { %v1319_v23 = vadd.f32 %v1317_v17, %v1307_v56  ;;  %v1291_v27 = vsub.f32 0.2225, %v1289_v2  ;;  %v1323_v30 = vmul.f32 %v1321_v19, %v1287_v22  ;;  %vm1343_vm1 = vcmp.eq.s32.totalorder %v1341_v55, 1 }
 0x22d   : > { %v1328_v21 = vadd.f32 %v1326_v43, %v1324_v15 }
 0x22e   : > { %v1295_v32 = vadd.f32 %v1293_v53, %v1291_v27  ;;  %v1325_v46 = vadd.f32 %v1323_v30, %v1319_v23 }
 0x230   : > { %v1327_v29 = vmul.f32 %v1295_v32, %v2174_v28 }
 0x232   : > { %v1824_v25 = vpop.eup %1823  ;;  %v1329_v18 = vadd.f32 %v1327_v29, %v1325_v46 }
 0x233   : > { %v1332_v31 = vmul.f32 %v1824_v25, %v1328_v21 }
 0x235   : > { %v1344_v26 = vsel %vm1342_vm0, 1.0, %v1332_v31 }
 0x236   : > { %1346 = vst [vmem:[%s194_s27] sm:$0xff] %v1344_v26 }
 0x238   : > { %v1826_v33 = vpop.eup %1825 }
 0x239   : > { %v1333_v34 = vmul.f32 %v1826_v33, %v1329_v18 }
 0x23b   : > { %v1345_v36 = vsel %vm1343_vm1, 1.0, %v1333_v34 }
 0x23c   : > { %1347 = vst [vmem:[%s194_s27 + $0x8] sm:$0xff] %v1345_v36 }
 0x23d   : > { %1892 = shalt.err (!%p1889_p3)
}
 0x23e   : > { %s1893_s10 = scalar_lea.hbm %s2198_s5, 256  ;;  %s1897_s19 = scalar_lea.hbm %s2245_s3, 512 }
 0x23f   : > { %p1894_p2 = scmp.ne.s32.totalorder %s2198_s5, %s1893_s10  ;;  %p1898_p7 = scmp.lt.s32.totalorder %s2198_s5, %s2245_s3 }
 0x240   : > { %p1899_p6 = scmp.lt.s32.totalorder %s1897_s19, %s1893_s10 }
 0x241   : > { %p1895_p4 = pnand %p1894_p2, %p2018_p5 }
 0x242   : > { %p1900_p9 = por %p1899_p6, %p1898_p7 }
 0x243   : > { %p1896_p13 = pneg %p1895_p4 }
 0x245   : > { %p1901_p10 = pnand %p1900_p9, %p1896_p13 }
 0x247   : > { %1904 = shalt.err (!%p1901_p10)
}
 0x248   : > { %s1958_s25 = smov 128   ;;  %s1959_s26 = smov 8  }
 0x249   : > { %1579 = dma.vmem_to_hbm [thread:$0]  (%p2018_p5), %s2193_s28, 256, %s2198_s5, %s2202_s6, %s1958_s25, %s1958_s25, %s1959_s26  }
 0x24a PF: > { %p1596_p12 = scmp.ge.s32.totalorder %s1947_s15, 2  ;;  %s1377_s27 = sand.u32 1, %s1935_s12  }
 0x24b   : > { %p2255_p8 = scmp.ne.s32.totalorder %s2248_s23, 0  ;;  %s1378_s29 = scalar_lea.sflag [#allocation4], %s1377_s27 }
 0x24d   : > { %p1589_p11 = pnand %p1596_p12, %p2255_p8 }
 0x24f   : > { %p1590_p0 = pneg %p1589_p11 }
 0x251   : > { %1930 = dma.done.wait (%p1590_p0), %s1378_s29, 256  }
 0x252   : > { %1932 = vsyncadd (%p1590_p0), %s1378_s29, 4294967040  ;;  %p15_p1 = scmp.ge.s32.totalorder %s2005_s18, 4   ;;  %s2256_s12 = smov %s1939_s13 }
 0x253   : > { %s2257_s13 = smov %s1943_s14  ;;  %s2258_s14 = smov %s2016_s21 }
 0x254   : > { %s2259_s15 = smov %s2005_s18  ;;  %17 = sbr.rel (!%p15_p1) target bundleno = 5 (0x5), region = 76 }
 0x259   :  { %1383 = vsyncpa [#allocation3], 1 }
 0x25a   :  { %1385 = vsyncpa [#allocation3 + $0x1], 1 }
 0x25b   :  { %1386 = vsyncpa [#allocation6], 1 }
 0x25c   :  { %1387 = vsyncpa [#allocation4], 1 }
 0x25d   :  { %1389 = vsyncpa [#allocation4 + $0x1], 1 }

</bundles_post_ra>
